<compile_context>
chip_gen: v5e
topology: v5e:2x2
jax: 0.10.0
libtpu: 0.0.40
codegen_flags: <defaults>
</compile_context>

<pallas_src>
import functools

import jax
import jax.numpy as jnp
from jax.experimental import pallas as pl
from jax.experimental.pallas import tpu as pltpu

_LANE = 128
_SUBLANE = 8


# ----------------------------------------------------------------------------
# Kernels: the whole MLP forward (matmuls + bias + ReLU) fused in one kernel.
# ----------------------------------------------------------------------------
def _dense(h, w_ref, b_ref, relu):
    w = w_ref[...]
    # Cast the LHS to the weight dtype (bf16 fast path; no-op for f32) on the
    # VPU right before the MXU; accumulate in f32.
    out = jnp.dot(h.astype(w.dtype), w, preferred_element_type=jnp.float32)
    out = out + b_ref[...]                       # bias kept in f32
    return jnp.maximum(out, 0.0) if relu else out


def _mlp1_kernel(x_ref, w1_ref, b1_ref, w2_ref, b2_ref, o_ref):
    # layers == 1:  Linear(784, N) -> relu -> Linear(N, 10)
    h = _dense(x_ref[...], w1_ref, b1_ref, relu=True)
    o_ref[...] = _dense(h, w2_ref, b2_ref, relu=False).astype(o_ref.dtype)


def _mlp2_kernel(x_ref, w1_ref, b1_ref, w2_ref, b2_ref, w3_ref, b3_ref, o_ref):
    # layers == 2:  Linear(784, N) -> relu -> Linear(N, 784-N) -> relu
    #               -> Linear(784-N, 10)
    h = _dense(x_ref[...], w1_ref, b1_ref, relu=True)
    h = _dense(h, w2_ref, b2_ref, relu=True)
    o_ref[...] = _dense(h, w3_ref, b3_ref, relu=False).astype(o_ref.dtype)


# ----------------------------------------------------------------------------
# Helpers
# ----------------------------------------------------------------------------
def _round_up(n, m):
    return ((n + m - 1) // m) * m


def _pad2d(a, rows, cols):
    pr, pc = rows - a.shape[0], cols - a.shape[1]
    if pr == 0 and pc == 0:
        return a
    return jnp.pad(a, ((0, pr), (0, pc)))        # exact zero padding


def _replicated_spec(shape):
    # Full-array block, constant index_map -> stays resident in VMEM across
    # all batch tiles; single-buffered since the block never changes.
    nd = len(shape)
    return pl.BlockSpec(shape, lambda i: (0,) * nd,
                        pipeline_mode=pl.Buffered(1))


def _pick_batch_tile(B, batch_tile):
    # 128-row-aligned tile, capped so B > 128 always gives >= 2 tiles
    # (both v7x TensorCores busy); tiny batches fall back to an 8-row granule.
    if B > _LANE:
        bt = min(batch_tile, _round_up(pl.cdiv(B, 2), _LANE))
    else:
        bt = min(batch_tile, _round_up(B, _SUBLANE))
    return max(_SUBLANE, bt)


# ----------------------------------------------------------------------------
# One-time parameter preparation (hoisted out of the forward pass)
# ----------------------------------------------------------------------------
def prepare_params(params, compute_dtype=jnp.bfloat16):
    """Pads and casts MLP parameters ONCE.

    params: sequence of (W, b); W in (in, out) layout (i.e. transposed from
            PyTorch's nn.Linear weight), b of shape (out,) or (1, out).
    Each layer's output width is zero-padded to a multiple of 128 and the next
    layer's input width is matched to it; layer 1 keeps K = 784 (no K pad).
    Weights are cast to compute_dtype (bf16 recommended on v5e/v6e/v7x);
    biases stay f32.
    """
    padded = []
    cur_in = params[0][0].shape[0]               # 784 -- left unpadded
    for w, b in params:
        w = jnp.asarray(w)
        b = jnp.asarray(b).reshape(1, -1)
        out_p = _round_up(w.shape[1], _LANE)
        w_p = _pad2d(w, cur_in, out_p).astype(compute_dtype)
        b_p = _pad2d(b, 1, out_p).astype(jnp.float32)
        padded.append((w_p, b_p))
        cur_in = out_p
    return tuple(padded)


# ----------------------------------------------------------------------------
# Forward pass
# ----------------------------------------------------------------------------
@functools.partial(jax.jit,
                   static_argnames=("n_out", "batch_tile", "out_dtype"))
def mlp_forward(x, padded_params, *, n_out=10, batch_tile=512,
                out_dtype=jnp.float32):
    """Runs the MLPModel forward pass.

    x             : (B, 784); f32 or -- preferably, on every generation
                    including v5e -- bf16.  Consumed as-is (never padded or
                    cast in the wrapper).
    padded_params : output of prepare_params().
    out_dtype     : kernel write-back dtype (bf16 halves that HBM traffic).
    Returns (B, n_out) logits.
    """
    B, D = x.shape
    num_linear = len(padded_params)
    out_p = padded_params[-1][0].shape[1]

    bt = _pick_batch_tile(B, batch_tile)
    num_tiles = pl.cdiv(B, bt)                   # last tile may overhang B

    in_specs = [pl.BlockSpec((bt, D), lambda i: (i, 0))]
    flat = []
    for w_p, b_p in padded_params:
        flat += [w_p, b_p]
        in_specs += [_replicated_spec(w_p.shape),
                     _replicated_spec(b_p.shape)]

    kernel = _mlp1_kernel if num_linear == 2 else _mlp2_kernel

    out_padded = pl.pallas_call(
        kernel,
        out_shape=jax.ShapeDtypeStruct((B, out_p), out_dtype),
        grid_spec=pltpu.PrefetchScalarGridSpec(
            num_scalar_prefetch=0,
            grid=(num_tiles,),
            in_specs=in_specs,
            out_specs=pl.BlockSpec((bt, out_p), lambda i: (i, 0)),
        ),
        compiler_params=pltpu.CompilerParams(
            dimension_semantics=("parallel",),   # batch tiles shard over TCs
        ),
    )(x, *flat)

    return out_padded[:, :n_out]


# ----------------------------------------------------------------------------
# Deterministic parameter construction (mimics nn.Linear's U(-1/sqrt(in), ..))
# ----------------------------------------------------------------------------
def init_linear(key, fan_in, fan_out, dtype=jnp.float32):
    kw, kb = jax.random.split(key)
    bound = 1.0 / jnp.sqrt(float(fan_in))
    w = jax.random.uniform(kw, (fan_in, fan_out), dtype, -bound, bound)
    b = jax.random.uniform(kb, (1, fan_out), dtype, -bound, bound)
    return w, b


def init_mlp_params(key, layers, neurons):
    if layers == 1:
        k1, k2 = jax.random.split(key, 2)
        return (init_linear(k1, 784, neurons),
                init_linear(k2, neurons, 10))
    else:
        k1, k2, k3 = jax.random.split(key, 3)
        return (init_linear(k1, 784, neurons),
                init_linear(k2, neurons, 784 - neurons),
                init_linear(k3, 784 - neurons, 10))


def reference_forward(x, params):
    # Pure-JAX reference (full-precision matmuls) for correctness checking.
    h = x
    for i, (w, b) in enumerate(params):
        h = jnp.dot(h, w, precision="highest") + b.reshape(1, -1)
        if i < len(params) - 1:
            h = jnp.maximum(h, 0.0)
    return h


if __name__ == "__main__":
    key = jax.random.PRNGKey(0)
    kx, kp1, kp2 = jax.random.split(key, 3)

    B = 200           # not a multiple of the tile -> exercises the partial tile
    NEURONS = 100     # not a multiple of 128      -> exercises lane padding
    BATCH_TILE = 128  # >= 2 tiles here (v7x megacore); default is 512

    x_f32 = jax.random.normal(kx, (B, 784), dtype=jnp.float32)
    x_bf16 = x_f32.astype(jnp.bfloat16)   # "upstream produces bf16" path

    ok = True
    for layers, kp in ((1, kp1), (2, kp2)):
        params = init_mlp_params(kp, layers, NEURONS)
        ref = reference_forward(x_f32, params)

        # --- f32 operands, f32 write-back ---------------------------------
        p_f32 = prepare_params(params, compute_dtype=jnp.float32)
        out = jax.block_until_ready(
            mlp_forward(x_f32, p_f32, batch_tile=BATCH_TILE))
        ok &= out.shape == (B, 10)
        # Tolerance allows for MXU pass-count differences vs the reference.
        ok &= bool(jnp.allclose(out, ref, atol=1e-2, rtol=1e-2))

        # --- bf16 operands (recommended on v5e/v6e/v7x), bf16 write-back ---
        p_bf16 = prepare_params(params, compute_dtype=jnp.bfloat16)
        out_bf16 = jax.block_until_ready(
            mlp_forward(x_bf16, p_bf16, batch_tile=BATCH_TILE,
                        out_dtype=jnp.bfloat16))
        ok &= out_bf16.shape == (B, 10)
        ok &= bool(jnp.allclose(out_bf16.astype(jnp.float32), ref,
                                atol=6e-2, rtol=6e-2))

    if ok:
        print("KERNEL_OK")
    else:
        raise SystemExit("MISMATCH")
</pallas_src>

<mosaic_0001>
module attributes {stable_mosaic.version = 11 : i64} {
  func.func @_mlp1_kernel(%arg0: i32, %arg1: memref<128x784xf32, #tpu.memory_space<vmem>>, %arg2: memref<784x128xf32, #tpu.memory_space<vmem>>, %arg3: memref<1x128xf32, #tpu.memory_space<vmem>>, %arg4: memref<128x128xf32, #tpu.memory_space<vmem>>, %arg5: memref<1x128xf32, #tpu.memory_space<vmem>>, %arg6: memref<128x128xf32, #tpu.memory_space<vmem>>) attributes {dimension_semantics = [#tpu.dimension_semantics<parallel>], iteration_bounds = array<i64: 2>, scalar_prefetch = 0 : i64, scratch_operands = 0 : i64, tpu.core_type = #tpu.core_type<tc>, window_params = [{transform_indices = @transform_0, window_bounds = array<i64: 128, 784>}, {pipeline_mode = #tpu.pipeline_mode<synchronous>, transform_indices = @transform_1, window_bounds = array<i64: 784, 128>}, {pipeline_mode = #tpu.pipeline_mode<synchronous>, transform_indices = @transform_2, window_bounds = array<i64: 1, 128>}, {pipeline_mode = #tpu.pipeline_mode<synchronous>, transform_indices = @transform_3, window_bounds = array<i64: 128, 128>}, {pipeline_mode = #tpu.pipeline_mode<synchronous>, transform_indices = @transform_4, window_bounds = array<i64: 1, 128>}, {transform_indices = @transform_5, window_bounds = array<i64: 128, 128>}]} {
    %c0 = arith.constant 0 : index
    %c0_0 = arith.constant 0 : index
    %0 = vector.load %arg1[%c0, %c0_0] : memref<128x784xf32, #tpu.memory_space<vmem>>, vector<128x784xf32>
    %c0_1 = arith.constant 0 : index
    %c0_2 = arith.constant 0 : index
    %1 = vector.load %arg2[%c0_1, %c0_2] : memref<784x128xf32, #tpu.memory_space<vmem>>, vector<784x128xf32>
    %cst = arith.constant dense<0.000000e+00> : vector<128x128xf32>
    %2 = tpu.matmul %0, %1, %cst {dimension_numbers = #tpu.dot_dimension_numbers<[1], [0], [0], [1], [0, 0, 1, 1], [], []>} : vector<128x784xf32>, vector<784x128xf32>, vector<128x128xf32> -> vector<128x128xf32>
    %c0_3 = arith.constant 0 : index
    %c0_4 = arith.constant 0 : index
    %3 = vector.load %arg3[%c0_3, %c0_4] : memref<1x128xf32, #tpu.memory_space<vmem>>, vector<1x128xf32>
    %4 = vector.broadcast %3 : vector<1x128xf32> to vector<128x128xf32>
    %5 = arith.addf %2, %4 : vector<128x128xf32>
    %cst_5 = arith.constant 0.000000e+00 : f32
    %6 = vector.broadcast %cst_5 : f32 to vector<128x128xf32>
    %7 = arith.maximumf %5, %6 : vector<128x128xf32>
    %c0_6 = arith.constant 0 : index
    %c0_7 = arith.constant 0 : index
    %8 = vector.load %arg4[%c0_6, %c0_7] : memref<128x128xf32, #tpu.memory_space<vmem>>, vector<128x128xf32>
    %cst_8 = arith.constant dense<0.000000e+00> : vector<128x128xf32>
    %9 = tpu.matmul %7, %8, %cst_8 {dimension_numbers = #tpu.dot_dimension_numbers<[1], [0], [0], [1], [0, 0, 1, 1], [], []>} : vector<128x128xf32>, vector<128x128xf32>, vector<128x128xf32> -> vector<128x128xf32>
    %c0_9 = arith.constant 0 : index
    %c0_10 = arith.constant 0 : index
    %10 = vector.load %arg5[%c0_9, %c0_10] : memref<1x128xf32, #tpu.memory_space<vmem>>, vector<1x128xf32>
    %11 = vector.broadcast %10 : vector<1x128xf32> to vector<128x128xf32>
    %12 = arith.addf %9, %11 : vector<128x128xf32>
    %c0_11 = arith.constant 0 : index
    %c0_12 = arith.constant 0 : index
    %13 = vector.load %arg6[%c0_11, %c0_12] : memref<128x128xf32, #tpu.memory_space<vmem>>, vector<128x128xf32>
    tpu.vector_store %arg6[%c0_11, %c0_12], %12 {strides = array<i32>} : memref<128x128xf32, #tpu.memory_space<vmem>>, vector<128x128xf32>,
    return
  }
  func.func @transform_0(%arg0: i32) -> (i32, i32) {
    %c0_i32 = arith.constant 0 : i32
    %c0_i32_0 = arith.constant 0 : i32
    return %arg0, %c0_i32 : i32, i32
  }
  func.func @transform_1(%arg0: i32) -> (i32, i32) {
    %c0_i32 = arith.constant 0 : i32
    %c0_i32_0 = arith.constant 0 : i32
    %c0_i32_1 = arith.constant 0 : i32
    return %c0_i32, %c0_i32_0 : i32, i32
  }
  func.func @transform_2(%arg0: i32) -> (i32, i32) {
    %c0_i32 = arith.constant 0 : i32
    %c0_i32_0 = arith.constant 0 : i32
    %c0_i32_1 = arith.constant 0 : i32
    return %c0_i32, %c0_i32_0 : i32, i32
  }
  func.func @transform_3(%arg0: i32) -> (i32, i32) {
    %c0_i32 = arith.constant 0 : i32
    %c0_i32_0 = arith.constant 0 : i32
    %c0_i32_1 = arith.constant 0 : i32
    return %c0_i32, %c0_i32_0 : i32, i32
  }
  func.func @transform_4(%arg0: i32) -> (i32, i32) {
    %c0_i32 = arith.constant 0 : i32
    %c0_i32_0 = arith.constant 0 : i32
    %c0_i32_1 = arith.constant 0 : i32
    return %c0_i32, %c0_i32_0 : i32, i32
  }
  func.func @transform_5(%arg0: i32) -> (i32, i32) {
    %c0_i32 = arith.constant 0 : i32
    %c0_i32_0 = arith.constant 0 : i32
    return %arg0, %c0_i32 : i32, i32
  }
}

</mosaic_0001>

<bundles_post_ra>
// kernel: mlp_forward.1
= control target key start
LH: loop header
LB: loop body
LE: loop exit
PB: predicated region body
PF: predicated region fallthrough
CT: control target
= control target key end

     0   :  { %10 = vsyncpa [#allocation3], 0  ;;  %s2356_s0 = inlined_call_operand.hbm [shape: f32[200,784], index: 0, kind: input, shape index: {}]   ;;  %s2357_s1 = inlined_call_operand.hbm [shape: f32[784,128], index: 1, kind: input, shape index: {}]   ;;  %s2358_s2 = inlined_call_operand.vmem [shape: f32[1,128], index: 2, kind: input, shape index: {}]   ;;  %s2359_s3 = inlined_call_operand.hbm [shape: f32[128,128], index: 3, kind: input, shape index: {}]   ;;  %s2360_s4 = inlined_call_operand.vmem [shape: f32[1,128], index: 4, kind: input, shape index: {}]   ;;  %s2361_s5 = inlined_call_operand.vmem [shape: f32[200,128], index: 5, kind: output, shape index: {}]  }
   0x1   :  { %12 = vsyncpa [#allocation3 + $0x1], 0 }
   0x2   :  { %13 = vsyncpa [#allocation5], 0  ;;  %s1854_s18 = smov 0   ;;  %s1856_s19 = smov 0  }
   0x3   :  { %s1858_s20 = smov 0   ;;  %s1860_s21 = smov 0  }
   0x4 LB: > { %s1873_s22 = sadd.s32 4294967295, %s1783_s21   ;;  %s1876_s23 = sadd.s32 1, %s1783_s21   ;;  %s1783_s21 = sphi %s1860_s21, %s2378_s21   ;;  %s1779_s20 = sphi %s1858_s20, %s2377_s20   ;;  %s1775_s19 = sphi %s1856_s19, %s2376_s19   ;;  %s1771_s18 = sphi %s1854_s18, %s2375_s18  }
   0x5   : > { %s23_s24 = ssub.s32 %s1783_s21, %s1876_s23  ;;  %s26_s25 = sadd.s32 1, %s1779_s20 }
   0x6   : > { %p24_p0 = scmp.eq.s32.totalorder %s23_s24, 0  ;;  %p33_p1 = scmp.ne.s32.totalorder %s1779_s20, %s1775_s19 }
   0x7   : > { %p34_p2 = scmp.eq.s32.totalorder %s1783_s21, 0  ;;  %p39_p3 = scmp.ne.s32.totalorder %s1775_s19, %s1771_s18 }
   0x8   : > { %s1886_s26 = scalar_select %p24_p0, %s1779_s20, %s26_s25  }
   0x9   : > { %p1888_p4 = por %p34_p2, %p33_p1  ;;  %p2362_p5 = scmp.eq.s32.totalorder %s1873_s22, 0 }
   0xa   : > { %p147_p6 = scmp.eq.s32.totalorder %s1873_s22, 1  ;;  %p1436_p7 = scmp.ge.s32.totalorder %s1783_s21, 1 }
   0xb   : > { %p1897_p8 = por %p2362_p5, %p39_p3  ;;  %p160_p9 = scmp.lt.s32.totalorder %s1783_s21, 3 }
   0xc   : > { %p1902_p10 = por %p147_p6, %p33_p1  ;;  %s171_s8 = sshll.u32 %s2357_s1, 4  ;;  %s172_s8 = int_to_ptr.hbm [resolvable:$true] %s171_s8 }
   0xd   : > { %p1906_p11 = pnand %p1436_p7, %p160_p9  ;;  %s1817_s9 = smov [#allocation4]  }
   0xe   : > { %s173_s10 = sshll.u32 %s1817_s9, 4  ;;  %s188_s13 = sshll.u32 %s2359_s3, 4  ;;  %s174_s10 = int_to_ptr.vmem [resolvable:$true] %s173_s10  ;;  %s189_s13 = int_to_ptr.hbm [resolvable:$true] %s188_s13 }
   0xf   : > { %p1499_p12 = pneg %p1906_p11  ;;  %s1818_s14 = smov 128  }
  0x10   : > { %s1819_s15 = smov 8   ;;  %s1820_s16 = smov [#allocation6]  }
  0x11   : > { %p1500_p13 = pnand %p1499_p12, %p2362_p5  ;;  %s190_s17 = sshll.u32 %s1820_s16, 4  ;;  %s191_s17 = int_to_ptr.vmem [resolvable:$true] %s190_s17 }
  0x12   : > { %p1439_p0 = scmp.ge.s32.totalorder %s1783_s21, 2 }
  0x13   : > { %1502 = dma.hbm_to_vmem [thread:$0]  (!%p1500_p13), %s172_s8, 12544, %s174_s10, [#allocation5], %s1818_s14, %s1818_s14, %s1819_s15  }
  0x14   : > { %1505 = dma.hbm_to_vmem [thread:$0]  (!%p1500_p13), %s189_s13, 2048, %s191_s17, [#allocation5], %s1818_s14, %s1818_s14, %s1819_s15  }
  0x15   : > { %203 = sbr.rel (%p1439_p0) target bundleno = 67 (0x43), region = 32 }
  0x1a   : > { %206 = sbr.rel (!%p1888_p4) target bundleno = 67 (0x43), region = 36  ;;  %s207_s18 = sand.u32 (%p1888_p4), 1, %s1779_s20  }
  0x1b   : > { %s1440_s24 = sshll.u32 (%p1888_p4), %s1783_s21, 4  ;;  %s1487_s25 = smul.u32 (%p1888_p4), 896, %s207_s18 }
  0x1c   : > { %s213_s6 = ssub.s32 (%p1888_p4), 25, %s1440_s24  ;;  %s1925_s10 = scalar_lea.sflag (%p1888_p4), [#allocation3], %s207_s18 }
  0x1d   : > { %p214_p1 = scmp.lt.s32.totalorder (%p1888_p4), %s213_s6, 16  ;;  %s211_s11 = scalar_lea.vmem (%p1888_p4), [#allocation2], %s1487_s25 }
  0x1f   : > { %s2380_s6 = smov (!%p214_p1, %s213_s6), 16 }
  0x20   : > { %s1442_s7 = smul.u32 56, %s2380_s6 }
  0x22   : > { %s218_s8 = ssub.s32 896, %s1442_s7 }
  0x23   : > { %s219_s9 = sshll.u32 %s218_s8, 4 }
  0x24   : > { %220 = vsyncadd %s1925_s10, %s219_s9  ;;  %p1928_p2 = scmp.ne.s32.totalorder %s1442_s7, 0  ;;  %s1488_s12 = smul.u32 896, %s1783_s21 }
  0x25   : > { %s1933_s13 = sshll.u32 %s211_s11, 4  ;;  %s1935_s14 = smul.u32 896, %s2380_s6  ;;  %s229_s13 = int_to_ptr.vmem [resolvable:$true] %s1933_s13 }
  0x26   : > { %s224_s17 = scalar_lea.hbm %s2356_s0, %s1488_s12  ;;  %s1685_s11 = scalar_lea.hbm %s2356_s0, 1400 }
  0x27   : > { %s226_s18 = sshll.u32 %s224_s17, 4  ;;  %s1676_s21 = sshrl.u32 %s1935_s14, 4  ;;  %s1941_s18 = int_to_ptr.hbm [resolvable:$true] %s226_s18 }
  0x28   : > { %s1674_s24 = sshra.s32 %s1941_s18, 4  ;;  %s1712_s25 = sshll.u32 %s1676_s21, 4  ;;  %s1675_s24 = int_to_ptr.hbm [resolvable:$true] %s1674_s24 }
  0x29   : > { %p1678_p3 = scmp.ne.s32.totalorder %s1712_s25, %s1935_s14  ;;  %s1679_s7 = sadd.s32 1, %s1676_s21 }
  0x2a   : > { %p1686_p9 = scmp.lt.s32.totalorder %s1675_s24, %s2356_s0 }
  0x2b   : > { %s2382_s7 = smov (!%p1678_p3, %s1679_s7), %s1676_s21 }
  0x2c   : > { %s1681_s6 = scalar_lea.hbm %s1675_s24, %s2382_s7 }
  0x2d   : > { %p1682_p4 = scmp.ne.s32.totalorder %s1675_s24, %s1681_s6  ;;  %p1687_p12 = scmp.lt.s32.totalorder %s1685_s11, %s1681_s6 }
  0x2f   : > { %p1683_p6 = pnand %p1682_p4, %p1928_p2  ;;  %p1688_p13 = por %p1687_p12, %p1686_p9 }
  0x31   : > { %p1684_p7 = pneg %p1683_p6 }
  0x33   : > { %p1689_p0 = pnand %p1688_p13, %p1684_p7 }
  0x35   : > { %1692 = shalt.err (!%p1689_p0)
}
  0x36   : > { %s1693_s16 = sshra.s32 %s229_s13, 4  ;;  %s1821_s21 = smov [#allocation2]   ;;  %s1694_s16 = int_to_ptr.vmem [resolvable:$true] %s1693_s16 }
  0x37   : > { %s1700_s17 = scalar_lea.vmem %s1694_s16, %s2382_s7  ;;  %s1704_s25 = scalar_lea.vmem %s1821_s21, 1792 }
  0x38   : > { %p1701_p1 = scmp.ne.s32.totalorder %s1694_s16, %s1700_s17  ;;  %p1706_p6 = scmp.lt.s32.totalorder %s1704_s25, %s1700_s17 }
  0x3a   : > { %p1702_p3 = pnand %p1701_p1, %p1928_p2 }
  0x3c   : > { %p1703_p4 = pneg %p1702_p3 }
  0x3e   : > { %p1708_p5 = pnand %p1706_p6, %p1703_p4 }
  0x40   : > { %1711 = shalt.err (!%p1708_p5)
}
  0x41   : > { %s1822_s24 = smov 896   ;;  %s1823_s6 = smov 56  }
  0x42   : > { %234 = dma.hbm_to_vmem [thread:$0]  (%p1928_p2), %s1941_s18, %s1935_s14, %s229_s13, %s1925_s10, %s1822_s24, %s1822_s24, %s1823_s6  }
  0x43 PF: > { %240 = sbr.rel (%p1906_p11) target bundleno = 676 (0x2a4), region = 40  ;;  %s1968_s7 = sand.u32 (!%p1906_p11), 1, %s1775_s19  }
  0x44   : > { %s1489_s8 = smul.u32 (!%p1906_p11), 896, %s1968_s7  ;;  %s243_s9 = scalar_lea.sflag (!%p1906_p11), [#allocation3], %s1968_s7 }
  0x46   : > { %s1972_s11 = scalar_lea.vmem (!%p1906_p11), [#allocation2], %s1489_s8 }
  0x48   : > { %1762 = dma.done.wait (%p1897_p8), %s243_s9, 14336  }
  0x49   : > { %1764 = vsyncadd (%p1897_p8), %s243_s9, 4294952960  ;;  %p2368_p5 = scmp.eq.s32.totalorder %s1873_s22, 0 }
  0x4b   : > { %1766 = dma.done.wait (%p2368_p5), [#allocation5], 14592   ;;  %p2369_p11 = pmov %p2368_p5 }
  0x4c   : > { %v421_v0 = vld [vmem:[#allocation4 + $0x78] sm:$0xff]  ;;  %v420_v2 = vld [vmem:[#allocation4 + $0x70] sm:$0xff]  ;;  %v419_v6 = vld [vmem:[#allocation4 + $0x68] sm:$0xff]  ;;  %vm508_vm0 = vcmask 130048   ;;  %s1450_s10 = sshll.u32 %s1968_s7, 7  ;;  %s1468_s18 = sshll.u32 (%p1902_p10), %s1873_s22, 4 }
  0x4d   : > { %1768 = vsyncadd (%p2369_p11), [#allocation5], 4294952704  ;;  %v453_v1 = vld [vmem:[#allocation4 + $0x178] sm:$0xff]  ;;  %557 = vmatpush.msra.mxu0 %v421_v0  ;;  %v452_v4 = vld [vmem:[#allocation4 + $0x170] sm:$0xff]  ;;  %s2231_s14 = scalar_lea.vmem [#allocation7], %s1450_s10   ;;  %s1484_s12 = sshll.u32 (%p1902_p10), %s1873_s22, 7 }
  0x4e   : > { %687 = vmatpush.msra.mxu2 %v453_v1  ;;  %v437_v3 = vld [vmem:[#allocation4 + $0xf8] sm:$0xff]  ;;  %v436_v7 = vld [vmem:[#allocation4 + $0xf0] sm:$0xff]  ;;  %v451_v8 = vld [vmem:[#allocation4 + $0x168] sm:$0xff]  ;;  %s1137_s15 = ssub.s32 (%p1902_p10), 25, %s1468_s18  ;;  %s2256_s21 = scalar_lea.vmem (%p1902_p10), %s2361_s5, %s1484_s12  }
  0x4f   : > { %v469_v5 = vld [vmem:[#allocation4 + $0x1f8] sm:$0xff]  ;;  %622 = vmatpush.msra.mxu1 %v437_v3  ;;  %558 = vmatpush.msra.mxu0 %v420_v2  ;;  %v468_v9 = vld [vmem:[#allocation4 + $0x1f0] sm:$0xff]  ;;  %v435_v10 = vld [vmem:[#allocation4 + $0xe8] sm:$0xff]  ;;  %p1138_p8 = scmp.lt.s32.totalorder (%p1902_p10), %s1137_s15, 16 }
  0x50   : > { %752 = vmatpush.msra.mxu3 %v469_v5  ;;  %688 = vmatpush.msra.mxu2 %v452_v4  ;;  %v418_v11 = vld [vmem:[#allocation4 + $0x60] sm:$0xff]  ;;  %v467_v13 = vld [vmem:[#allocation4 + $0x1e8] sm:$0xff]  ;;  %v417_v16 = vld [vmem:[#allocation4 + $0x58] sm:$0xff] }
  0x51   : > { %623 = vmatpush.msra.mxu1 %v436_v7  ;;  %v450_v12 = vld [vmem:[#allocation4 + $0x160] sm:$0xff]  ;;  %559 = vmatpush.msra.mxu0 %v419_v6  ;;  %v449_v17 = vld [vmem:[#allocation4 + $0x158] sm:$0xff]  ;;  %v416_v20 = vld [vmem:[#allocation4 + $0x50] sm:$0xff] }
  0x52   : > { %753 = vmatpush.msra.mxu3 %v468_v9  ;;  %689 = vmatpush.msra.mxu2 %v451_v8  ;;  %v434_v14 = vld [vmem:[#allocation4 + $0xe0] sm:$0xff]  ;;  %v433_v18 = vld [vmem:[#allocation4 + $0xd8] sm:$0xff]  ;;  %v448_v21 = vld [vmem:[#allocation4 + $0x150] sm:$0xff] }
  0x53   : > { %v466_v15 = vld [vmem:[#allocation4 + $0x1e0] sm:$0xff]  ;;  %624 = vmatpush.msra.mxu1 %v435_v10  ;;  %560 = vmatpush.msra.mxu0 %v418_v11  ;;  %v465_v19 = vld [vmem:[#allocation4 + $0x1d8] sm:$0xff]  ;;  %v432_v22 = vld [vmem:[#allocation4 + $0xd0] sm:$0xff] }
  0x54   : > { %754 = vmatpush.msra.mxu3 %v467_v13  ;;  %690 = vmatpush.msra.mxu2 %v450_v12  ;;  %v464_v23 = vld [vmem:[#allocation4 + $0x1d0] sm:$0xff]  ;;  %v415_v24 = vld [vmem:[#allocation4 + $0x48] sm:$0xff]  ;;  %v414_v28 = vld [vmem:[#allocation4 + $0x40] sm:$0xff] }
  0x55   : > { %625 = vmatpush.msra.mxu1 %v434_v14  ;;  %561 = vmatpush.msra.mxu0 %v417_v16  ;;  %v447_v25 = vld [vmem:[#allocation4 + $0x148] sm:$0xff]  ;;  %v446_v29 = vld [vmem:[#allocation4 + $0x140] sm:$0xff]  ;;  %v413_v32 = vld [vmem:[#allocation4 + $0x38] sm:$0xff] }
  0x56   : > { %755 = vmatpush.msra.mxu3 %v466_v15  ;;  %691 = vmatpush.msra.mxu2 %v449_v17  ;;  %v431_v26 = vld [vmem:[#allocation4 + $0xc8] sm:$0xff]  ;;  %v430_v30 = vld [vmem:[#allocation4 + $0xc0] sm:$0xff]  ;;  %v445_v33 = vld [vmem:[#allocation4 + $0x138] sm:$0xff] }
  0x57   : > { %626 = vmatpush.msra.mxu1 %v433_v18  ;;  %562 = vmatpush.msra.mxu0 %v416_v20  ;;  %v463_v27 = vld [vmem:[#allocation4 + $0x1c8] sm:$0xff]  ;;  %v462_v31 = vld [vmem:[#allocation4 + $0x1c0] sm:$0xff]  ;;  %v429_v34 = vld [vmem:[#allocation4 + $0xb8] sm:$0xff] }
  0x58   : > { %756 = vmatpush.msra.mxu3 %v465_v19  ;;  %692 = vmatpush.msra.mxu2 %v448_v21  ;;  %v461_v35 = vld [vmem:[#allocation4 + $0x1b8] sm:$0xff]  ;;  %v412_v36 = vld [vmem:[#allocation4 + $0x30] sm:$0xff]  ;;  %v411_v40 = vld [vmem:[#allocation4 + $0x28] sm:$0xff] }
  0x59   : > { %627 = vmatpush.msra.mxu1 %v432_v22  ;;  %563 = vmatpush.msra.mxu0 %v415_v24  ;;  %v444_v37 = vld [vmem:[#allocation4 + $0x130] sm:$0xff]  ;;  %v443_v41 = vld [vmem:[#allocation4 + $0x128] sm:$0xff]  ;;  %v410_v44 = vld [vmem:[#allocation4 + $0x20] sm:$0xff] }
  0x5a   : > { %757 = vmatpush.msra.mxu3 %v464_v23  ;;  %693 = vmatpush.msra.mxu2 %v447_v25  ;;  %v428_v38 = vld [vmem:[#allocation4 + $0xb0] sm:$0xff]  ;;  %v427_v42 = vld [vmem:[#allocation4 + $0xa8] sm:$0xff]  ;;  %v442_v45 = vld [vmem:[#allocation4 + $0x120] sm:$0xff] }
  0x5b   : > { %628 = vmatpush.msra.mxu1 %v431_v26  ;;  %564 = vmatpush.msra.mxu0 %v414_v28  ;;  %v460_v39 = vld [vmem:[#allocation4 + $0x1b0] sm:$0xff]  ;;  %v459_v43 = vld [vmem:[#allocation4 + $0x1a8] sm:$0xff]  ;;  %v426_v46 = vld [vmem:[#allocation4 + $0xa0] sm:$0xff] }
  0x5c   : > { %758 = vmatpush.msra.mxu3 %v463_v27  ;;  %694 = vmatpush.msra.mxu2 %v446_v29  ;;  %v458_v47 = vld [vmem:[#allocation4 + $0x1a0] sm:$0xff]  ;;  %v409_v48 = vld [vmem:[#allocation4 + $0x18] sm:$0xff]  ;;  %v408_v52 = vld [vmem:[#allocation4 + $0x10] sm:$0xff] }
  0x5d   : > { %629 = vmatpush.msra.mxu1 %v430_v30  ;;  %565 = vmatpush.msra.mxu0 %v413_v32  ;;  %v441_v49 = vld [vmem:[#allocation4 + $0x118] sm:$0xff]  ;;  %v440_v53 = vld [vmem:[#allocation4 + $0x110] sm:$0xff]  ;;  %v407_v56 = vld [vmem:[#allocation4 + $0x8] sm:$0xff] }
  0x5e   : > { %759 = vmatpush.msra.mxu3 %v462_v31  ;;  %695 = vmatpush.msra.mxu2 %v445_v33  ;;  %v425_v50 = vld [vmem:[#allocation4 + $0x98] sm:$0xff]  ;;  %v424_v54 = vld [vmem:[#allocation4 + $0x90] sm:$0xff]  ;;  %v439_v57 = vld [vmem:[#allocation4 + $0x108] sm:$0xff] }
  0x5f   : > { %630 = vmatpush.msra.mxu1 %v429_v34  ;;  %566 = vmatpush.msra.mxu0 %v412_v36  ;;  %v457_v51 = vld [vmem:[#allocation4 + $0x198] sm:$0xff]  ;;  %v456_v55 = vld [vmem:[#allocation4 + $0x190] sm:$0xff]  ;;  %v423_v58 = vld [vmem:[#allocation4 + $0x88] sm:$0xff] }
  0x60   : > { %760 = vmatpush.msra.mxu3 %v461_v35  ;;  %696 = vmatpush.msra.mxu2 %v444_v37  ;;  %v455_v59 = vld [vmem:[#allocation4 + $0x188] sm:$0xff]  ;;  %v406_v60 = vld [vmem:[#allocation4] sm:$0xff]  ;;  %v296_v63 = vld [vmem:[%s1972_s11 + $0x10] sm:$0xff] }
  0x61   : > { %631 = vmatpush.msra.mxu1 %v428_v38  ;;  %567 = vmatpush.msra.mxu0 %v411_v40  ;;  %v438_v61 = vld [vmem:[#allocation4 + $0x100] sm:$0xff]  ;;  %v503_v0 = vld [vmem:[#allocation4 + $0x308] sm:$0xff]  ;;  %v297_v4 = vld [vmem:[%s1972_s11 + $0x18] sm:$0xff] }
  0x62   : > { %761 = vmatpush.msra.mxu3 %v460_v39  ;;  %697 = vmatpush.msra.mxu2 %v443_v41  ;;  %v294_v62 = vld [vmem:[%s1972_s11] sm:$0xff]  ;;  %v295_v3 = vld [vmem:[%s1972_s11 + $0x8] sm:$0xff]  ;;  %v485_v5 = vld [vmem:[#allocation4 + $0x278] sm:$0xff] }
  0x63   : > { %632 = vmatpush.msra.mxu1 %v427_v42  ;;  %568 = vmatpush.msra.mxu0 %v410_v44  ;;  %v422_v1 = vld [vmem:[#allocation4 + $0x80] sm:$0xff]  ;;  %v501_v6 = vld [vmem:[#allocation4 + $0x2f8] sm:$0xff]  ;;  %v484_v7 = vld [vmem:[#allocation4 + $0x270] sm:$0xff] }
  0x64   : > { %762 = vmatpush.msra.mxu3 %v459_v43  ;;  %698 = vmatpush.msra.mxu2 %v442_v45  ;;  %v454_v2 = vld [vmem:[#allocation4 + $0x180] sm:$0xff]  ;;  %v500_v8 = vld [vmem:[#allocation4 + $0x2f0] sm:$0xff]  ;;  %v483_v9 = vld [vmem:[#allocation4 + $0x268] sm:$0xff] }
  0x65   : > { %633 = vmatpush.msra.mxu1 %v426_v46  ;;  %569 = vmatpush.msra.mxu0 %v409_v48  ;;  %v301_v10 = vld [vmem:[%s1972_s11 + $0x38] sm:$0xff]  ;;  %v303_v11 = vld [vmem:[%s1972_s11 + $0x48] sm:$0xff]  ;;  %v482_v13 = vld [vmem:[#allocation4 + $0x260] sm:$0xff] }
  0x66   : > { %763 = vmatpush.msra.mxu3 %v458_v47  ;;  %699 = vmatpush.msra.mxu2 %v441_v49  ;;  %v499_v12 = vld [vmem:[#allocation4 + $0x2e8] sm:$0xff]  ;;  %v302_v14 = vld [vmem:[%s1972_s11 + $0x40] sm:$0xff]  ;;  %v304_v15 = vld [vmem:[%s1972_s11 + $0x50] sm:$0xff] }
  0x67   : > { %634 = vmatpush.msra.mxu1 %v425_v50  ;;  %570 = vmatpush.msra.mxu0 %v408_v52  ;;  %v498_v16 = vld [vmem:[#allocation4 + $0x2e0] sm:$0xff]  ;;  %v481_v17 = vld [vmem:[#allocation4 + $0x258] sm:$0xff]  ;;  %v480_v19 = vld [vmem:[#allocation4 + $0x250] sm:$0xff] }
  0x68   : > { %764 = vmatpush.msra.mxu3 %v457_v51  ;;  %700 = vmatpush.msra.mxu2 %v440_v53  ;;  %v497_v18 = vld [vmem:[#allocation4 + $0x2d8] sm:$0xff]  ;;  %v496_v20 = vld [vmem:[#allocation4 + $0x2d0] sm:$0xff]  ;;  %v310_v22 = vld [vmem:[%s1972_s11 + $0x80] sm:$0xff] }
  0x69   : > { %635 = vmatpush.msra.mxu1 %v424_v54  ;;  %571 = vmatpush.msra.mxu0 %v407_v56  ;;  %v308_v21 = vld [vmem:[%s1972_s11 + $0x70] sm:$0xff]  ;;  %v309_v23 = vld [vmem:[%s1972_s11 + $0x78] sm:$0xff]  ;;  %v311_v24 = vld [vmem:[%s1972_s11 + $0x88] sm:$0xff] }
  0x6a   : > { %765 = vmatpush.msra.mxu3 %v456_v55  ;;  %701 = vmatpush.msra.mxu2 %v439_v57  ;;  %v479_v25 = vld [vmem:[#allocation4 + $0x248] sm:$0xff]  ;;  %v317_v28 = vld [vmem:[%s1972_s11 + $0xb8] sm:$0xff]  ;;  %v316_v29 = vld [vmem:[%s1972_s11 + $0xb0] sm:$0xff] }
  0x6b   : > { %636 = vmatpush.msra.mxu1 %v423_v58  ;;  %572 = vmatpush.msra.mxu0 %v406_v60  ;;  %v495_v26 = vld [vmem:[#allocation4 + $0x2c8] sm:$0xff]  ;;  %v318_v30 = vld [vmem:[%s1972_s11 + $0xc0] sm:$0xff]  ;;  %v324_v34 = vld [vmem:[%s1972_s11 + $0xf0] sm:$0xff] }
  0x6c   : > { %766 = vmatpush.msra.mxu3 %v455_v59  ;;  %702 = vmatpush.msra.mxu2 %v438_v61  ;;  %v315_v27 = vld [vmem:[%s1972_s11 + $0xa8] sm:$0xff]  ;;  %v478_v31 = vld [vmem:[#allocation4 + $0x240] sm:$0xff]  ;;  %v325_v36 = vld [vmem:[%s1972_s11 + $0xf8] sm:$0xff] }
  0x6d   : > { %573 = vmatmul.f32.vlgmr.msra.gmra.mxu0 %v294_v62  ;;  %703 = vmatmul.f32.vlgmr.msra.gmra.mxu2 %v296_v63  ;;  %v494_v32 = vld [vmem:[#allocation4 + $0x2c0] sm:$0xff]  ;;  %v323_v35 = vld [vmem:[%s1972_s11 + $0xe8] sm:$0xff]  ;;  %v477_v38 = vld [vmem:[#allocation4 + $0x238] sm:$0xff] }
  0x6e   : > { %961 = vmatpush.msrb.mxu2 %v503_v0  ;;  %637 = vmatpush.msra.mxu1 %v422_v1  ;;  %v322_v33 = vld [vmem:[%s1972_s11 + $0xe0] sm:$0xff]  ;;  %v493_v39 = vld [vmem:[#allocation4 + $0x2b8] sm:$0xff]  ;;  %v331_v41 = vld [vmem:[%s1972_s11 + $0x128] sm:$0xff] }
  0x6f   : > { %767 = vmatpush.msra.mxu3 %v454_v2  ;;  %638 = vmatmul.f32.vlgmr.msra.gmra.mxu1 %v295_v3  ;;  %v502_v37 = vld [vmem:[#allocation4 + $0x300] sm:$0xff]  ;;  %v329_v40 = vld [vmem:[%s1972_s11 + $0x118] sm:$0xff]  ;;  %v332_v43 = vld [vmem:[%s1972_s11 + $0x130] sm:$0xff] }
  0x70   : > { %768 = vmatmul.f32.vlgmr.msra.gmra.mxu3 %v297_v4  ;;  %817 = vmatpush.msrb.mxu0 %v485_v5  ;;  %v330_v42 = vld [vmem:[%s1972_s11 + $0x120] sm:$0xff]  ;;  %v476_v44 = vld [vmem:[#allocation4 + $0x230] sm:$0xff]  ;;  %v337_v48 = vld [vmem:[%s1972_s11 + $0x158] sm:$0xff] }
  0x71   : > { %882 = vmatpush.msrb.mxu1 %v501_v6  ;;  %962 = vmatpush.msrb.mxu2 %v502_v37  ;;  %v492_v45 = vld [vmem:[#allocation4 + $0x2b0] sm:$0xff]  ;;  %v338_v47 = vld [vmem:[%s1972_s11 + $0x160] sm:$0xff]  ;;  %v339_v49 = vld [vmem:[%s1972_s11 + $0x168] sm:$0xff] }
  0x72   : > { %818 = vmatpush.msrb.mxu0 %v484_v7  ;;  %v336_v46 = vld [vmem:[%s1972_s11 + $0x150] sm:$0xff]  ;;  %v475_v50 = vld [vmem:[#allocation4 + $0x228] sm:$0xff]  ;;  %v345_v53 = vld [vmem:[%s1972_s11 + $0x198] sm:$0xff] }
  0x73   : > { %883 = vmatpush.msrb.mxu1 %v500_v8  ;;  %v491_v51 = vld [vmem:[#allocation4 + $0x2a8] sm:$0xff]  ;;  %v344_v54 = vld [vmem:[%s1972_s11 + $0x190] sm:$0xff]  ;;  %v346_v55 = vld [vmem:[%s1972_s11 + $0x1a0] sm:$0xff] }
  0x74   : > { %819 = vmatpush.msrb.mxu0 %v483_v9  ;;  %v343_v52 = vld [vmem:[%s1972_s11 + $0x188] sm:$0xff]  ;;  %v474_v56 = vld [vmem:[#allocation4 + $0x220] sm:$0xff]  ;;  %v352_v59 = vld [vmem:[%s1972_s11 + $0x1d0] sm:$0xff] }
  0x75   : > { %576 = vmatmul.f32.gmra.mxu0 %v301_v10  ;;  %706 = vmatmul.f32.gmra.mxu2 %v303_v11  ;;  %v490_v57 = vld [vmem:[#allocation4 + $0x2a0] sm:$0xff]  ;;  %v351_v60 = vld [vmem:[%s1972_s11 + $0x1c8] sm:$0xff]  ;;  %v353_v61 = vld [vmem:[%s1972_s11 + $0x1d8] sm:$0xff] }
  0x76   : > { %884 = vmatpush.msrb.mxu1 %v499_v12  ;;  %820 = vmatpush.msrb.mxu0 %v482_v13  ;;  %v350_v58 = vld [vmem:[%s1972_s11 + $0x1c0] sm:$0xff]  ;;  %v473_v62 = vld [vmem:[#allocation4 + $0x218] sm:$0xff]  ;;  %v359_v1 = vld [vmem:[%s1972_s11 + $0x208] sm:$0xff] }
  0x77   : > { %641 = vmatmul.f32.gmra.mxu1 %v302_v14  ;;  %v489_v63 = vld [vmem:[#allocation4 + $0x298] sm:$0xff]  ;;  %v358_v2 = vld [vmem:[%s1972_s11 + $0x200] sm:$0xff]  ;;  %v360_v3 = vld [vmem:[%s1972_s11 + $0x210] sm:$0xff] }
  0x78   : > { %771 = vmatmul.f32.gmra.mxu3 %v304_v15  ;;  %885 = vmatpush.msrb.mxu1 %v498_v16  ;;  %v357_v0 = vld [vmem:[%s1972_s11 + $0x1f8] sm:$0xff]  ;;  %v472_v4 = vld [vmem:[#allocation4 + $0x210] sm:$0xff]  ;;  %v366_v7 = vld [vmem:[%s1972_s11 + $0x240] sm:$0xff] }
  0x79   : > { %821 = vmatpush.msrb.mxu0 %v481_v17  ;;  %v488_v5 = vld [vmem:[#allocation4 + $0x290] sm:$0xff]  ;;  %v365_v8 = vld [vmem:[%s1972_s11 + $0x238] sm:$0xff]  ;;  %v367_v9 = vld [vmem:[%s1972_s11 + $0x248] sm:$0xff] }
  0x7a   : > { %886 = vmatpush.msrb.mxu1 %v497_v18  ;;  %v364_v6 = vld [vmem:[%s1972_s11 + $0x230] sm:$0xff]  ;;  %v471_v10 = vld [vmem:[#allocation4 + $0x208] sm:$0xff]  ;;  %v373_v13 = vld [vmem:[%s1972_s11 + $0x278] sm:$0xff] }
  0x7b   : > { %822 = vmatpush.msrb.mxu0 %v480_v19  ;;  %v487_v11 = vld [vmem:[#allocation4 + $0x288] sm:$0xff]  ;;  %v372_v14 = vld [vmem:[%s1972_s11 + $0x270] sm:$0xff]  ;;  %v374_v15 = vld [vmem:[%s1972_s11 + $0x280] sm:$0xff] }
  0x7c   : > { %887 = vmatpush.msrb.mxu1 %v496_v20  ;;  %v371_v12 = vld [vmem:[%s1972_s11 + $0x268] sm:$0xff]  ;;  %v470_v16 = vld [vmem:[#allocation4 + $0x200] sm:$0xff]  ;;  %v380_v19 = vld [vmem:[%s1972_s11 + $0x2b0] sm:$0xff] }
  0x7d   : > { %579 = vmatmul.f32.gmra.mxu0 %v308_v21  ;;  %709 = vmatmul.f32.gmra.mxu2 %v310_v22  ;;  %v486_v17 = vld [vmem:[#allocation4 + $0x280] sm:$0xff]  ;;  %v379_v20 = vld [vmem:[%s1972_s11 + $0x2a8] sm:$0xff]  ;;  %v381_v21 = vld [vmem:[%s1972_s11 + $0x2b8] sm:$0xff] }
  0x7e   : > { %823 = vmatpush.msrb.mxu0 %v479_v25  ;;  %888 = vmatpush.msrb.mxu1 %v495_v26  ;;  %v378_v18 = vld [vmem:[%s1972_s11 + $0x2a0] sm:$0xff]  ;;  %v385_v22 = vld [vmem:[%s1972_s11 + $0x2d8] sm:$0xff]  ;;  %v388_v25 = vld [vmem:[%s1972_s11 + $0x2f0] sm:$0xff] }
  0x7f   : > { %644 = vmatmul.f32.gmra.mxu1 %v309_v23  ;;  %v387_v23 = vld [vmem:[%s1972_s11 + $0x2e8] sm:$0xff] }
  0x80   : > { %774 = vmatmul.f32.gmra.mxu3 %v311_v24  ;;  %824 = vmatpush.msrb.mxu0 %v478_v31  ;;  %v386_v24 = vld [vmem:[%s1972_s11 + $0x2e0] sm:$0xff]  ;;  %v1043_v26 = vld [vmem:[#allocation6 + $0x78] sm:$0xff] }
  0x81   : > { %889 = vmatpush.msrb.mxu1 %v494_v32  ;;  %1048 = vmatpush.msrb.mxu3 %v1043_v26  ;;  %v1042_v31 = vld [vmem:[#allocation6 + $0x70] sm:$0xff]  ;;  %v399_v32 = vld [vmem:[%s1972_s11 + $0x348] sm:$0xff]  ;;  %v348_v26 = vld [vmem:[%s1972_s11 + $0x1b0] sm:$0xff] }
  0x82   : > { %825 = vmatpush.msrb.mxu0 %v477_v38  ;;  %v298_v38 = vld [vmem:[%s1972_s11 + $0x20] sm:$0xff] }
  0x83   : > { %890 = vmatpush.msrb.mxu1 %v493_v39  ;;  %1049 = vmatpush.msrb.mxu3 %v1042_v31  ;;  %v300_v39 = vld [vmem:[%s1972_s11 + $0x30] sm:$0xff]  ;;  %v354_v31 = vld [vmem:[%s1972_s11 + $0x1e0] sm:$0xff] }
  0x84   : > { %826 = vmatpush.msrb.mxu0 %v476_v44 }
  0x85   : > { %582 = vmatmul.f32.gmra.mxu0 %v315_v27  ;;  %712 = vmatmul.f32.gmra.mxu2 %v317_v28  ;;  %v392_v27 = vld [vmem:[%s1972_s11 + $0x310] sm:$0xff]  ;;  %v394_v28 = vld [vmem:[%s1972_s11 + $0x320] sm:$0xff] }
  0x86   : > { %891 = vmatpush.msrb.mxu1 %v492_v45  ;;  %827 = vmatpush.msrb.mxu0 %v475_v50  ;;  %v305_v45 = vld [vmem:[%s1972_s11 + $0x58] sm:$0xff] }
  0x87   : > { %647 = vmatmul.f32.gmra.mxu1 %v316_v29  ;;  %v393_v29 = vld [vmem:[%s1972_s11 + $0x318] sm:$0xff] }
  0x88   : > { %777 = vmatmul.f32.gmra.mxu3 %v318_v30  ;;  %892 = vmatpush.msrb.mxu1 %v491_v51  ;;  %v395_v30 = vld [vmem:[%s1972_s11 + $0x328] sm:$0xff] }
  0x89   : > { %828 = vmatpush.msrb.mxu0 %v474_v56  ;;  %v1038_v56 = vld [vmem:[#allocation6 + $0x50] sm:$0xff] }
  0x8a   : > { %893 = vmatpush.msrb.mxu1 %v490_v57 }
  0x8b   : > { %829 = vmatpush.msrb.mxu0 %v473_v62  ;;  %v320_v62 = vld [vmem:[%s1972_s11 + $0xd0] sm:$0xff] }
  0x8c   : > { %894 = vmatpush.msrb.mxu1 %v489_v63  ;;  %v1037_v63 = vld [vmem:[#allocation6 + $0x48] sm:$0xff] }
  0x8d   : > { %585 = vmatmul.f32.gmra.mxu0 %v322_v33  ;;  %715 = vmatmul.f32.gmra.mxu2 %v324_v34  ;;  %v401_v33 = vld [vmem:[%s1972_s11 + $0x358] sm:$0xff]  ;;  %v400_v34 = vld [vmem:[%s1972_s11 + $0x350] sm:$0xff] }
  0x8e   : > { %830 = vmatpush.msrb.mxu0 %v472_v4  ;;  %895 = vmatpush.msrb.mxu1 %v488_v5  ;;  %v327_v5 = vld [vmem:[%s1972_s11 + $0x108] sm:$0xff] }
  0x8f   : > { %650 = vmatmul.f32.gmra.mxu1 %v323_v35  ;;  %v402_v35 = vld [vmem:[%s1972_s11 + $0x360] sm:$0xff] }
  0x90   : > { %780 = vmatmul.f32.gmra.mxu3 %v325_v36  ;;  %831 = vmatpush.msrb.mxu0 %v471_v10  ;;  %v1041_v36 = vld [vmem:[#allocation6 + $0x68] sm:$0xff]  ;;  %v335_v10 = vld [vmem:[%s1972_s11 + $0x148] sm:$0xff] }
  0x91   : > { %896 = vmatpush.msrb.mxu1 %v487_v11  ;;  %1050 = vmatpush.msrb.mxu3 %v1041_v36 }
  0x92   : > { %832 = vmatpush.msrb.mxu0 %v470_v16  ;;  %v340_v16 = vld [vmem:[%s1972_s11 + $0x170] sm:$0xff] }
  0x93   : > { %897 = vmatpush.msrb.mxu1 %v486_v17  ;;  %v342_v17 = vld [vmem:[%s1972_s11 + $0x180] sm:$0xff] }
  0x95   : > { %588 = vmatmul.f32.gmra.mxu0 %v329_v40  ;;  %718 = vmatmul.f32.gmra.mxu2 %v331_v41  ;;  %v299_v41 = vld [vmem:[%s1972_s11 + $0x28] sm:$0xff] }
  0x97   : > { %653 = vmatmul.f32.gmra.mxu1 %v330_v42  ;;  %v1040_v42 = vld [vmem:[#allocation6 + $0x60] sm:$0xff] }
  0x98   : > { %783 = vmatmul.f32.gmra.mxu3 %v332_v43 }
  0x99   : > { %1051 = vmatpush.msrb.mxu3 %v1040_v42 }
  0x9d   : > { %591 = vmatmul.f32.gmra.mxu0 %v336_v46  ;;  %721 = vmatmul.f32.gmra.mxu2 %v338_v47  ;;  %v307_v46 = vld [vmem:[%s1972_s11 + $0x68] sm:$0xff] }
  0x9f   : > { %656 = vmatmul.f32.gmra.mxu1 %v337_v48  ;;  %v306_v48 = vld [vmem:[%s1972_s11 + $0x60] sm:$0xff] }
  0xa0   : > { %786 = vmatmul.f32.gmra.mxu3 %v339_v49  ;;  %v1039_v49 = vld [vmem:[#allocation6 + $0x58] sm:$0xff] }
  0xa1   : > { %1052 = vmatpush.msrb.mxu3 %v1039_v49 }
  0xa3   : > { %1053 = vmatpush.msrb.mxu3 %v1038_v56 }
  0xa5   : > { %594 = vmatmul.f32.gmra.mxu0 %v343_v52  ;;  %724 = vmatmul.f32.gmra.mxu2 %v345_v53  ;;  %v312_v52 = vld [vmem:[%s1972_s11 + $0x90] sm:$0xff]  ;;  %v314_v53 = vld [vmem:[%s1972_s11 + $0xa0] sm:$0xff] }
  0xa6   : > { %1054 = vmatpush.msrb.mxu3 %v1037_v63  ;;  %v370_v63 = vld [vmem:[%s1972_s11 + $0x260] sm:$0xff] }
  0xa7   : > { %659 = vmatmul.f32.gmra.mxu1 %v344_v54 }
  0xa8   : > { %789 = vmatmul.f32.gmra.mxu3 %v346_v55  ;;  %v313_v55 = vld [vmem:[%s1972_s11 + $0x98] sm:$0xff] }
  0xad   : > { %597 = vmatmul.f32.gmra.mxu0 %v350_v58  ;;  %727 = vmatmul.f32.gmra.mxu2 %v352_v59  ;;  %v319_v59 = vld [vmem:[%s1972_s11 + $0xc8] sm:$0xff] }
  0xaf   : > { %662 = vmatmul.f32.gmra.mxu1 %v351_v60  ;;  %v321_v60 = vld [vmem:[%s1972_s11 + $0xd8] sm:$0xff] }
  0xb0   : > { %792 = vmatmul.f32.gmra.mxu3 %v353_v61 }
  0xb5   : > { %600 = vmatmul.f32.gmra.mxu0 %v357_v0  ;;  %730 = vmatmul.f32.gmra.mxu2 %v359_v1 }
  0xb7   : > { %665 = vmatmul.f32.gmra.mxu1 %v358_v2  ;;  %v326_v2 = vld [vmem:[%s1972_s11 + $0x100] sm:$0xff] }
  0xb8   : > { %795 = vmatmul.f32.gmra.mxu3 %v360_v3  ;;  %v328_v3 = vld [vmem:[%s1972_s11 + $0x110] sm:$0xff] }
  0xbd   : > { %603 = vmatmul.f32.gmra.mxu0 %v364_v6  ;;  %733 = vmatmul.f32.gmra.mxu2 %v366_v7  ;;  %v1036_v6 = vld [vmem:[#allocation6 + $0x40] sm:$0xff] }
  0xbe   : > { %1055 = vmatpush.msrb.mxu3 %v1036_v6 }
  0xbf   : > { %668 = vmatmul.f32.gmra.mxu1 %v365_v8 }
  0xc0   : > { %798 = vmatmul.f32.gmra.mxu3 %v367_v9  ;;  %v333_v9 = vld [vmem:[%s1972_s11 + $0x138] sm:$0xff] }
  0xc5   : > { %606 = vmatmul.f32.gmra.mxu0 %v371_v12  ;;  %736 = vmatmul.f32.gmra.mxu2 %v373_v13  ;;  %v334_v12 = vld [vmem:[%s1972_s11 + $0x140] sm:$0xff]  ;;  %v1035_v13 = vld [vmem:[#allocation6 + $0x38] sm:$0xff] }
  0xc6   : > { %1056 = vmatpush.msrb.mxu3 %v1035_v13 }
  0xc7   : > { %671 = vmatmul.f32.gmra.mxu1 %v372_v14 }
  0xc8   : > { %801 = vmatmul.f32.gmra.mxu3 %v374_v15 }
  0xcd   : > { %609 = vmatmul.f32.gmra.mxu0 %v378_v18  ;;  %739 = vmatmul.f32.gmra.mxu2 %v380_v19  ;;  %v341_v19 = vld [vmem:[%s1972_s11 + $0x178] sm:$0xff] }
  0xcf   : > { %674 = vmatmul.f32.gmra.mxu1 %v379_v20  ;;  %v1034_v20 = vld [vmem:[#allocation6 + $0x30] sm:$0xff] }
  0xd0   : > { %804 = vmatmul.f32.gmra.mxu3 %v381_v21 }
  0xd1   : > { %1057 = vmatpush.msrb.mxu3 %v1034_v20 }
  0xd5   : > { %612 = vmatmul.f32.gmra.mxu0 %v385_v22  ;;  %742 = vmatmul.f32.gmra.mxu2 %v387_v23  ;;  %v347_v23 = vld [vmem:[%s1972_s11 + $0x1a8] sm:$0xff] }
  0xd7   : > { %677 = vmatmul.f32.gmra.mxu1 %v386_v24  ;;  %v349_v24 = vld [vmem:[%s1972_s11 + $0x1b8] sm:$0xff] }
  0xd8   : > { %807 = vmatmul.f32.gmra.mxu3 %v388_v25 }
  0xdd   : > { %615 = vmatmul.f32.gmra.mxu0 %v392_v27  ;;  %745 = vmatmul.f32.gmra.mxu2 %v394_v28  ;;  %v1033_v27 = vld [vmem:[#allocation6 + $0x28] sm:$0xff] }
  0xde   : > { %1058 = vmatpush.msrb.mxu3 %v1033_v27 }
  0xdf   : > { %680 = vmatmul.f32.gmra.mxu1 %v393_v29  ;;  %v2129_v29 = vld [vmem:[%s2358_s2] ss:$0 sm:$0xff] }
  0xe0   : > { %810 = vmatmul.f32.gmra.mxu3 %v395_v30 }
  0xe5   : > { %618 = vmatmul.f32.gmra.mxu0 %v399_v32  ;;  %748 = vmatmul.f32.gmra.mxu2 %v401_v33  ;;  %v356_v32 = vld [vmem:[%s1972_s11 + $0x1f0] sm:$0xff] }
  0xe7   : > { %683 = vmatmul.f32.gmra.mxu1 %v400_v34 }
  0xe8   : > { %813 = vmatmul.f32.gmra.mxu3 %v402_v35  ;;  %v355_v35 = vld [vmem:[%s1972_s11 + $0x1e8] sm:$0xff] }
  0xea   : > { %v2046_v37 = vpop.f32.mrf.mxu0 }
  0xec   : > { %v2050_v40 = vpop.f32.mrf.mxu1 }
  0xed   : > { %833 = vmatmul.f32.vlgmr.msrb.gmra.mxu0 %v298_v38  ;;  %1451 = vmatmul.msk.f32.vlgmr.msrb.gmra.mxu2 %vm508_vm0, %v300_v39  ;;  %v1032_v38 = vld [vmem:[#allocation6 + $0x20] sm:$0xff] }
  0xee   : > { %1059 = vmatpush.msrb.mxu3 %v1032_v38  ;;  %v383_v38 = vld [vmem:[%s1972_s11 + $0x2c8] sm:$0xff] }
  0xef   : > { %898 = vmatmul.f32.vlgmr.msrb.gmra.mxu1 %v299_v41 }
  0xf0   : > { %v2054_v43 = vpop.f32.mrf.mxu2 }
  0xf2   : > { %v2056_v44 = vpop.f32.mrf.mxu0 }
  0xf3   : > { %v769_v27 = vpop.f32.mrf.mxu3 }
  0xf4   : > { %v2060_v47 = vpop.f32.mrf.mxu1 }
  0xf5   : > { %836 = vmatmul.f32.gmra.mxu0 %v305_v45  ;;  %1452 = vmatmul.msk.f32.gmra.mxu2 %vm508_vm0, %v307_v46  ;;  %v361_v45 = vld [vmem:[%s1972_s11 + $0x218] sm:$0xff]  ;;  %v363_v46 = vld [vmem:[%s1972_s11 + $0x228] sm:$0xff] }
  0xf7   : > { %901 = vmatmul.f32.gmra.mxu1 %v306_v48 }
  0xf8   : > { %v2064_v50 = vpop.f32.mrf.mxu2 }
  0xfa   : > { %v2066_v51 = vpop.f32.mrf.mxu0 }
  0xfc   : > { %v2070_v54 = vpop.f32.mrf.mxu1 }
  0xfd   : > { %839 = vmatmul.f32.gmra.mxu0 %v312_v52  ;;  %1453 = vmatmul.msk.f32.gmra.mxu2 %vm508_vm0, %v314_v53  ;;  %v362_v52 = vld [vmem:[%s1972_s11 + $0x220] sm:$0xff] }
  0xff   : > { %904 = vmatmul.f32.gmra.mxu1 %v313_v55  ;;  %v1031_v55 = vld [vmem:[#allocation6 + $0x18] sm:$0xff] }
 0x100   : > { %v2074_v57 = vpop.f32.mrf.mxu2  ;;  %1060 = vmatpush.msrb.mxu3 %v1031_v55 }
 0x102   : > { %v2076_v58 = vpop.f32.mrf.mxu0 }
 0x104   : > { %v2080_v61 = vpop.f32.mrf.mxu1 }
 0x105   : > { %842 = vmatmul.f32.gmra.mxu0 %v319_v59  ;;  %1454 = vmatmul.msk.f32.gmra.mxu2 %vm508_vm0, %v321_v60 }
 0x107   : > { %907 = vmatmul.f32.gmra.mxu1 %v320_v62  ;;  %v368_v62 = vld [vmem:[%s1972_s11 + $0x250] sm:$0xff] }
 0x108   : > { %v2084_v0 = vpop.f32.mrf.mxu2 }
 0x10a   : > { %v2086_v1 = vpop.f32.mrf.mxu0 }
 0x10c   : > { %v2090_v4 = vpop.f32.mrf.mxu1 }
 0x10d   : > { %845 = vmatmul.f32.gmra.mxu0 %v326_v2  ;;  %1455 = vmatmul.msk.f32.gmra.mxu2 %vm508_vm0, %v328_v3 }
 0x10f   : > { %910 = vmatmul.f32.gmra.mxu1 %v327_v5  ;;  %v369_v5 = vld [vmem:[%s1972_s11 + $0x258] sm:$0xff] }
 0x110   : > { %v2094_v7 = vpop.f32.mrf.mxu2 }
 0x112   : > { %v2096_v8 = vpop.f32.mrf.mxu0 }
 0x114   : > { %v2100_v11 = vpop.f32.mrf.mxu1 }
 0x115   : > { %848 = vmatmul.f32.gmra.mxu0 %v333_v9  ;;  %1456 = vmatmul.msk.f32.gmra.mxu2 %vm508_vm0, %v335_v10  ;;  %v1030_v9 = vld [vmem:[#allocation6 + $0x10] sm:$0xff] }
 0x116   : > { %1061 = vmatpush.msrb.mxu3 %v1030_v9 }
 0x117   : > { %913 = vmatmul.f32.gmra.mxu1 %v334_v12 }
 0x118   : > { %v2104_v14 = vpop.f32.mrf.mxu2 }
 0x11a   : > { %v2106_v15 = vpop.f32.mrf.mxu0 }
 0x11c   : > { %v2110_v18 = vpop.f32.mrf.mxu1 }
 0x11d   : > { %851 = vmatmul.f32.gmra.mxu0 %v340_v16  ;;  %1457 = vmatmul.msk.f32.gmra.mxu2 %vm508_vm0, %v342_v17  ;;  %v375_v16 = vld [vmem:[%s1972_s11 + $0x288] sm:$0xff]  ;;  %v377_v17 = vld [vmem:[%s1972_s11 + $0x298] sm:$0xff] }
 0x11f   : > { %916 = vmatmul.f32.gmra.mxu1 %v341_v19 }
 0x120   : > { %v2114_v21 = vpop.f32.mrf.mxu2 }
 0x122   : > { %v2116_v22 = vpop.f32.mrf.mxu0 }
 0x124   : > { %v2120_v25 = vpop.f32.mrf.mxu1 }
 0x125   : > { %854 = vmatmul.f32.gmra.mxu0 %v347_v23  ;;  %1458 = vmatmul.msk.f32.gmra.mxu2 %vm508_vm0, %v349_v24  ;;  %v376_v23 = vld [vmem:[%s1972_s11 + $0x290] sm:$0xff] }
 0x127   : > { %919 = vmatmul.f32.gmra.mxu1 %v348_v26  ;;  %v1029_v26 = vld [vmem:[#allocation6 + $0x8] sm:$0xff] }
 0x128   : > { %v2124_v28 = vpop.f32.mrf.mxu2  ;;  %1062 = vmatpush.msrb.mxu3 %v1029_v26 }
 0x12a   : > { %v598_v30 = vpop.f32.mrf.mxu0 }
 0x12b   : > { %v599_v33 = vadd.f32 %v2129_v29, %v598_v30 }
 0x12c   : > { %v663_v34 = vpop.f32.mrf.mxu1 }
 0x12d   : > { %v664_v36 = vadd.f32 %v663_v34, %v599_v33  ;;  %857 = vmatmul.f32.gmra.mxu0 %v354_v31  ;;  %1459 = vmatmul.msk.f32.gmra.mxu2 %vm508_vm0, %v356_v32  ;;  %v382_v33 = vld [vmem:[%s1972_s11 + $0x2c0] sm:$0xff]  ;;  %v384_v34 = vld [vmem:[%s1972_s11 + $0x2d0] sm:$0xff] }
 0x12f   : > { %922 = vmatmul.f32.gmra.mxu1 %v355_v35 }
 0x130   : > { %v728_v39 = vpop.f32.mrf.mxu2 }
 0x131   : > { %v2136_v41 = vadd.f32 %v728_v39, %v664_v36 }
 0x132   : > { %v601_v42 = vpop.f32.mrf.mxu0 }
 0x133   : > { %v602_v48 = vadd.f32 %v2129_v29, %v601_v42  ;;  %v1028_v42 = vld [vmem:[#allocation6] sm:$0xff] }
 0x134   : > { %v666_v49 = vpop.f32.mrf.mxu1  ;;  %1063 = vmatpush.msrb.mxu3 %v1028_v42 }
 0x135   : > { %v667_v53 = vadd.f32 %v666_v49, %v602_v48  ;;  %860 = vmatmul.f32.gmra.mxu0 %v361_v45  ;;  %1460 = vmatmul.msk.f32.gmra.mxu2 %vm508_vm0, %v363_v46  ;;  %v772_v48 = vpop.f32.mrf.mxu3 }
 0x137   : > { %925 = vmatmul.f32.gmra.mxu1 %v362_v52  ;;  %v389_v52 = vld [vmem:[%s1972_s11 + $0x2f8] sm:$0xff] }
 0x138   : > { %v731_v56 = vpop.f32.mrf.mxu2 }
 0x139   : > { %v2143_v59 = vadd.f32 %v731_v56, %v667_v53  ;;  %v391_v53 = vld [vmem:[%s1972_s11 + $0x308] sm:$0xff] }
 0x13a   : > { %v604_v60 = vpop.f32.mrf.mxu0 }
 0x13b   : > { %v605_v2 = vadd.f32 %v2129_v29, %v604_v60  ;;  %v390_v60 = vld [vmem:[%s1972_s11 + $0x300] sm:$0xff] }
 0x13c   : > { %v669_v3 = vpop.f32.mrf.mxu1 }
 0x13d   : > { %v670_v6 = vadd.f32 %v669_v3, %v605_v2  ;;  %863 = vmatmul.f32.gmra.mxu0 %v368_v62  ;;  %1461 = vmatmul.msk.f32.gmra.mxu2 %vm508_vm0, %v370_v63 }
 0x13f   : > { %928 = vmatmul.f32.gmra.mxu1 %v369_v5  ;;  %v396_v5 = vld [vmem:[%s1972_s11 + $0x330] sm:$0xff] }
 0x140   : > { %v734_v10 = vpop.f32.mrf.mxu2 }
 0x141   : > { %v2150_v12 = vadd.f32 %v734_v10, %v670_v6  ;;  %v398_v6 = vld [vmem:[%s1972_s11 + $0x340] sm:$0xff]  ;;  %v775_v10 = vpop.f32.mrf.mxu3 }
 0x142   : > { %v607_v13 = vpop.f32.mrf.mxu0 }
 0x143   : > { %v608_v19 = vadd.f32 %v2129_v29, %v607_v13 }
 0x144   : > { %v672_v20 = vpop.f32.mrf.mxu1 }
 0x145   : > { %v673_v24 = vadd.f32 %v672_v20, %v608_v19  ;;  %866 = vmatmul.f32.gmra.mxu0 %v375_v16  ;;  %1462 = vmatmul.msk.f32.gmra.mxu2 %vm508_vm0, %v377_v17  ;;  %v397_v16 = vld [vmem:[%s1972_s11 + $0x338] sm:$0xff]  ;;  %v575_v17 = vadd.f32 %v2129_v29, %v2046_v37  ;;  %v578_v37 = vadd.f32 %v2129_v29, %v2056_v44 }
 0x146   : > { %v581_v44 = vadd.f32 %v2129_v29, %v2066_v51 }
 0x147   : > { %931 = vmatmul.f32.gmra.mxu1 %v376_v23  ;;  %v640_v23 = vadd.f32 %v2050_v40, %v575_v17 }
 0x148   : > { %v737_v30 = vpop.f32.mrf.mxu2 }
 0x149   : > { %v2157_v31 = vadd.f32 %v737_v30, %v673_v24  ;;  %v403_v30 = vld [vmem:[%s1972_s11 + $0x368] sm:$0xff] }
 0x14a   : > { %v610_v32 = vpop.f32.mrf.mxu0 }
 0x14b   : > { %v611_v35 = vadd.f32 %v2129_v29, %v610_v32  ;;  %v405_v32 = vld [vmem:[%s1972_s11 + $0x378] sm:$0xff] }
 0x14c   : > { %v675_v36 = vpop.f32.mrf.mxu1 }
 0x14d   : > { %v676_v39 = vadd.f32 %v675_v36, %v611_v35  ;;  %869 = vmatmul.f32.gmra.mxu0 %v382_v33  ;;  %1463 = vmatmul.msk.f32.gmra.mxu2 %vm508_vm0, %v384_v34  ;;  %v404_v35 = vld [vmem:[%s1972_s11 + $0x370] sm:$0xff]  ;;  %v705_v36 = vadd.f32 %v2054_v43, %v640_v23 }
 0x14f   : > { %934 = vmatmul.f32.gmra.mxu1 %v383_v38  ;;  %v770_v42 = vadd.f32 %v769_v27, %v705_v36 }
 0x150   : > { %v740_v45 = vpop.f32.mrf.mxu2 }
 0x151   : > { %v2164_v46 = vadd.f32 %v740_v45, %v676_v39  ;;  %v778_v39 = vpop.f32.mrf.mxu3  ;;  %v643_v45 = vadd.f32 %v2060_v47, %v578_v37 }
 0x152   : > { %v613_v49 = vpop.f32.mrf.mxu0 }
 0x153   : > { %v614_v55 = vadd.f32 %v2129_v29, %v613_v49  ;;  %v708_v43 = vadd.f32 %v2064_v50, %v643_v45 }
 0x154   : > { %v678_v56 = vpop.f32.mrf.mxu1 }
 0x155   : > { %v679_v62 = vadd.f32 %v678_v56, %v614_v55  ;;  %872 = vmatmul.f32.gmra.mxu0 %v389_v52  ;;  %1464 = vmatmul.msk.f32.gmra.mxu2 %vm508_vm0, %v391_v53 }
 0x157   : > { %937 = vmatmul.f32.gmra.mxu1 %v390_v60 }
 0x158   : > { %v743_v63 = vpop.f32.mrf.mxu2 }
 0x159   : > { %v2171_v2 = vadd.f32 %v743_v63, %v679_v62  ;;  %v781_v60 = vpop.f32.mrf.mxu3  ;;  %v773_v63 = vadd.f32 %v772_v48, %v708_v43 }
 0x15a   : > { %v616_v3 = vpop.f32.mrf.mxu0 }
 0x15b   : > { %v617_v9 = vadd.f32 %v2129_v29, %v616_v3  ;;  %v646_v3 = vadd.f32 %v2070_v54, %v581_v44 }
 0x15c   : > { %v681_v13 = vpop.f32.mrf.mxu1 }
 0x15d   : > { %v682_v19 = vadd.f32 %v681_v13, %v617_v9  ;;  %875 = vmatmul.f32.gmra.mxu0 %v396_v5  ;;  %1465 = vmatmul.msk.f32.gmra.mxu2 %vm508_vm0, %v398_v6  ;;  %v711_v13 = vadd.f32 %v2074_v57, %v646_v3  ;;  %v587_v57 = vadd.f32 %v2129_v29, %v2086_v1 }
 0x15f   : > { %940 = vmatmul.f32.gmra.mxu1 %v397_v16  ;;  %v584_v16 = vadd.f32 %v2129_v29, %v2076_v58  ;;  %v776_v51 = vadd.f32 %v775_v10, %v711_v13 }
 0x160   : > { %v746_v20 = vpop.f32.mrf.mxu2 }
 0x161   : > { %v2181_v24 = vadd.f32 %v746_v20, %v682_v19  ;;  %v649_v19 = vadd.f32 %v2080_v61, %v584_v16  ;;  %v784_v48 = vpop.f32.mrf.mxu3 }
 0x162   : > { %v619_v26 = vpop.f32.mrf.mxu0 }
 0x163   : > { %v620_v33 = vadd.f32 %v2129_v29, %v619_v26 }
 0x164   : > { %v684_v34 = vpop.f32.mrf.mxu1 }
 0x165   : > { %v685_v38 = vadd.f32 %v684_v34, %v620_v33  ;;  %878 = vmatmul.f32.gmra.mxu0 %v403_v30  ;;  %1466 = vmatmul.msk.f32.gmra.mxu2 %vm508_vm0, %v405_v32  ;;  %v714_v32 = vadd.f32 %v2084_v0, %v649_v19  ;;  %v590_v0 = vadd.f32 %v2129_v29, %v2096_v8 }
 0x167   : > { %943 = vmatmul.f32.gmra.mxu1 %v404_v35  ;;  %v779_v34 = vadd.f32 %v778_v39, %v714_v32  ;;  %v652_v35 = vadd.f32 %v2090_v4, %v587_v57 }
 0x168   : > { %v749_v40 = vpop.f32.mrf.mxu2 }
 0x169   : > { %v2192_v49 = vadd.f32 %v749_v40, %v685_v38  ;;  %v787_v38 = vpop.f32.mrf.mxu3 }
 0x16a   : > { %v834_v52 = vpop.f32.mrf.mxu0 }
 0x16b   : > { %v835_v53 = vadd.f32 %v834_v52, %v770_v42  ;;  %v717_v42 = vadd.f32 %v2094_v7, %v652_v35 }
 0x16c   : > { %v899_v55 = vpop.f32.mrf.mxu1 }
 0x16d   : > { %v900_v56 = vadd.f32 %v899_v55, %v835_v53  ;;  %v782_v52 = vadd.f32 %v781_v60, %v717_v42  ;;  %v655_v53 = vadd.f32 %v2100_v11, %v590_v0 }
 0x170   : > { %v964_v62 = vpop.f32.mrf.mxu2 }
 0x171   : > { %v965_v5 = vadd.f32 %v964_v62, %v900_v56  ;;  %v720_v56 = vadd.f32 %v2104_v14, %v655_v53  ;;  %v593_v62 = vadd.f32 %v2129_v29, %v2106_v15  ;;  %v790_v7 = vpop.f32.mrf.mxu3  ;;  %v596_v14 = vadd.f32 %v2129_v29, %v2116_v22 }
 0x172   : > { %v837_v27 = vpop.f32.mrf.mxu0 }
 0x173   : > { %v1012_v6 = vmax.f32 %v965_v5, 0.0  ;;  %v838_v47 = vadd.f32 %v837_v27, %v773_v63  ;;  %v785_v3 = vadd.f32 %v784_v48, %v720_v56  ;;  %v658_v5 = vadd.f32 %v2110_v18, %v593_v62 }
 0x174   : > { %v902_v9 = vpop.f32.mrf.mxu1 }
 0x175   : > { %1064 = vmatmul.f32.vlgmr.msrb.gmra.mxu3 %v1012_v6  ;;  %v903_v50 = vadd.f32 %v902_v9, %v838_v47  ;;  %v723_v9 = vadd.f32 %v2114_v21, %v658_v5 }
 0x178   : > { %v967_v17 = vpop.f32.mrf.mxu2 }
 0x179   : > { %v968_v20 = vadd.f32 %v967_v17, %v903_v50  ;;  %v793_v15 = vpop.f32.mrf.mxu3  ;;  %v788_v50 = vadd.f32 %v787_v38, %v723_v9  ;;  %v661_v17 = vadd.f32 %v2120_v25, %v596_v14 }
 0x17a   : > { %v840_v23 = vpop.f32.mrf.mxu0 }
 0x17b   : > { %v1013_v54 = vmax.f32 %v968_v20, 0.0  ;;  %v841_v26 = vadd.f32 %v840_v23, %v776_v51  ;;  %v726_v23 = vadd.f32 %v2124_v28, %v661_v17 }
 0x17c   : > { %v905_v30 = vpop.f32.mrf.mxu1 }
 0x17d   : > { %1067 = vmatmul.f32.gmra.mxu3 %v1013_v54  ;;  %v906_v33 = vadd.f32 %v905_v30, %v841_v26  ;;  %v791_v26 = vadd.f32 %v790_v7, %v726_v23 }
 0x180   : > { %v970_v58 = vpop.f32.mrf.mxu2 }
 0x181   : > { %v971_v10 = vadd.f32 %v970_v58, %v906_v33  ;;  %v796_v22 = vpop.f32.mrf.mxu3 }
 0x182   : > { %v843_v36 = vpop.f32.mrf.mxu0  ;;  %v797_v42 = vadd.f32 %v796_v22, %v2143_v59 }
 0x183   : > { %v1014_v61 = vmax.f32 %v971_v10, 0.0  ;;  %v844_v37 = vadd.f32 %v843_v36, %v779_v34  ;;  %v794_v34 = vadd.f32 %v793_v15, %v2136_v41 }
 0x184   : > { %v908_v40 = vpop.f32.mrf.mxu1 }
 0x185   : > { %1070 = vmatmul.f32.gmra.mxu3 %v1014_v61  ;;  %v909_v45 = vadd.f32 %v908_v40, %v844_v37 }
 0x188   : > { %v973_v1 = vpop.f32.mrf.mxu2 }
 0x189   : > { %v974_v39 = vadd.f32 %v973_v1, %v909_v45  ;;  %v799_v28 = vpop.f32.mrf.mxu3 }
 0x18a   : > { %v846_v55 = vpop.f32.mrf.mxu0 }
 0x18b   : > { %v1015_v4 = vmax.f32 %v974_v39, 0.0  ;;  %v847_v43 = vadd.f32 %v846_v55, %v782_v52 }
 0x18c   : > { %v911_v44 = vpop.f32.mrf.mxu1 }
 0x18d   : > { %1073 = vmatmul.f32.gmra.mxu3 %v1015_v4  ;;  %v912_v63 = vadd.f32 %v911_v44, %v847_v43  ;;  %v800_v4 = vadd.f32 %v799_v28, %v2150_v12 }
 0x190   : > { %v976_v8 = vpop.f32.mrf.mxu2 }
 0x191   : > { %v977_v60 = vadd.f32 %v976_v8, %v912_v63  ;;  %v802_v39 = vpop.f32.mrf.mxu3 }
 0x192   : > { %v849_v27 = vpop.f32.mrf.mxu0 }
 0x193   : > { %v1016_v11 = vmax.f32 %v977_v60, 0.0  ;;  %v850_v6 = vadd.f32 %v849_v27, %v785_v3  ;;  %v803_v3 = vadd.f32 %v802_v39, %v2157_v31 }
 0x194   : > { %v914_v47 = vpop.f32.mrf.mxu1 }
 0x195   : > { %1076 = vmatmul.f32.gmra.mxu3 %v1016_v11  ;;  %v915_v13 = vadd.f32 %v914_v47, %v850_v6 }
 0x198   : > { %v979_v16 = vpop.f32.mrf.mxu2 }
 0x199   : > { %v980_v51 = vadd.f32 %v979_v16, %v915_v13  ;;  %v805_v8 = vpop.f32.mrf.mxu3 }
 0x19a   : > { %v852_v19 = vpop.f32.mrf.mxu0  ;;  %v806_v12 = vadd.f32 %v805_v8, %v2164_v46 }
 0x19b   : > { %v1017_v18 = vmax.f32 %v980_v51, 0.0  ;;  %v853_v20 = vadd.f32 %v852_v19, %v788_v50 }
 0x19c   : > { %v917_v48 = vpop.f32.mrf.mxu1 }
 0x19d   : > { %1079 = vmatmul.f32.gmra.mxu3 %v1017_v18  ;;  %v918_v54 = vadd.f32 %v917_v48, %v853_v20 }
 0x1a0   : > { %v982_v21 = vpop.f32.mrf.mxu2 }
 0x1a1   : > { %v983_v30 = vadd.f32 %v982_v21, %v918_v54  ;;  %v808_v13 = vpop.f32.mrf.mxu3 }
 0x1a2   : > { %v855_v29 = vpop.f32.mrf.mxu0  ;;  %v809_v31 = vadd.f32 %v808_v13, %v2171_v2 }
 0x1a3   : > { %v1018_v32 = vmax.f32 %v983_v30, 0.0  ;;  %v856_v57 = vadd.f32 %v855_v29, %v791_v26 }
 0x1a4   : > { %v920_v33 = vpop.f32.mrf.mxu1 }
 0x1a5   : > { %1082 = vmatmul.f32.gmra.mxu3 %v1018_v32  ;;  %v921_v58 = vadd.f32 %v920_v33, %v856_v57 }
 0x1a8   : > { %v985_v25 = vpop.f32.mrf.mxu2 }
 0x1a9   : > { %v986_v35 = vadd.f32 %v985_v25, %v921_v58  ;;  %v811_v54 = vpop.f32.mrf.mxu3 }
 0x1aa   : > { %v858_v10 = vpop.f32.mrf.mxu0  ;;  %v812_v30 = vadd.f32 %v811_v54, %v2181_v24 }
 0x1ab   : > { %v1019_v36 = vmax.f32 %v986_v35, 0.0  ;;  %v859_v61 = vadd.f32 %v858_v10, %v794_v34 }
 0x1ac   : > { %v923_v37 = vpop.f32.mrf.mxu1 }
 0x1ad   : > { %1085 = vmatmul.f32.gmra.mxu3 %v1019_v36  ;;  %v924_v38 = vadd.f32 %v923_v37, %v859_v61 }
 0x1b0   : > { %v988_v40 = vpop.f32.mrf.mxu2 }
 0x1b1   : > { %v989_v0 = vadd.f32 %v988_v40, %v924_v38  ;;  %v814_v58 = vpop.f32.mrf.mxu3 }
 0x1b2   : > { %v861_v45 = vpop.f32.mrf.mxu0  ;;  %v815_v34 = vadd.f32 %v814_v58, %v2192_v49 }
 0x1b3   : > { %v1020_v1 = vmax.f32 %v989_v0, 0.0  ;;  %v862_v52 = vadd.f32 %v861_v45, %v797_v42  ;;  %v1613_v42 = vld [vmem:[%s2360_s4] ss:$0 sm:$0xff] }
 0x1b4   : > { %v926_v53 = vpop.f32.mrf.mxu1 }
 0x1b5   : > { %1088 = vmatmul.f32.gmra.mxu3 %v1020_v1  ;;  %v927_v55 = vadd.f32 %v926_v53, %v862_v52 }
 0x1b8   : > { %v991_v41 = vpop.f32.mrf.mxu2 }
 0x1b9   : > { %v992_v43 = vadd.f32 %v991_v41, %v927_v55 }
 0x1ba   : > { %v864_v44 = vpop.f32.mrf.mxu0 }
 0x1bb   : > { %v1021_v56 = vmax.f32 %v992_v43, 0.0  ;;  %v865_v62 = vadd.f32 %v864_v44, %v800_v4 }
 0x1bc   : > { %v929_v7 = vpop.f32.mrf.mxu1 }
 0x1bd   : > { %1091 = vmatmul.f32.gmra.mxu3 %v1021_v56  ;;  %v930_v63 = vadd.f32 %v929_v7, %v865_v62 }
 0x1c0   : > { %v994_v59 = vpop.f32.mrf.mxu2 }
 0x1c1   : > { %v995_v5 = vadd.f32 %v994_v59, %v930_v63 }
 0x1c2   : > { %v867_v60 = vpop.f32.mrf.mxu0 }
 0x1c3   : > { %v1022_v27 = vmax.f32 %v995_v5, 0.0  ;;  %v868_v11 = vadd.f32 %v867_v60, %v803_v3 }
 0x1c4   : > { %v932_v6 = vpop.f32.mrf.mxu1 }
 0x1c5   : > { %1094 = vmatmul.f32.gmra.mxu3 %v1022_v27  ;;  %v933_v47 = vadd.f32 %v932_v6, %v868_v11 }
 0x1c8   : > { %v997_v9 = vpop.f32.mrf.mxu2 }
 0x1c9   : > { %v998_v14 = vadd.f32 %v997_v9, %v933_v47 }
 0x1ca   : > { %v870_v15 = vpop.f32.mrf.mxu0 }
 0x1cb   : > { %v1023_v16 = vmax.f32 %v998_v14, 0.0  ;;  %v871_v50 = vadd.f32 %v870_v15, %v806_v12 }
 0x1cc   : > { %v935_v17 = vpop.f32.mrf.mxu1 }
 0x1cd   : > { %1097 = vmatmul.f32.gmra.mxu3 %v1023_v16  ;;  %v936_v51 = vadd.f32 %v935_v17, %v871_v50 }
 0x1d0   : > { %v1000_v19 = vpop.f32.mrf.mxu2 }
 0x1d1   : > { %v1001_v18 = vadd.f32 %v1000_v19, %v936_v51 }
 0x1d2   : > { %v873_v20 = vpop.f32.mrf.mxu0 }
 0x1d3   : > { %v1024_v48 = vmax.f32 %v1001_v18, 0.0  ;;  %v874_v23 = vadd.f32 %v873_v20, %v809_v31 }
 0x1d4   : > { %v938_v21 = vpop.f32.mrf.mxu1 }
 0x1d5   : > { %1100 = vmatmul.f32.gmra.mxu3 %v1024_v48  ;;  %v939_v26 = vadd.f32 %v938_v21, %v874_v23 }
 0x1d8   : > { %v1003_v46 = vpop.f32.mrf.mxu2 }
 0x1d9   : > { %v1004_v22 = vadd.f32 %v1003_v46, %v939_v26 }
 0x1da   : > { %v876_v29 = vpop.f32.mrf.mxu0 }
 0x1db   : > { %v1025_v32 = vmax.f32 %v1004_v22, 0.0  ;;  %v877_v57 = vadd.f32 %v876_v29, %v812_v30 }
 0x1dc   : > { %v941_v33 = vpop.f32.mrf.mxu1 }
 0x1dd   : > { %1103 = vmatmul.f32.gmra.mxu3 %v1025_v32  ;;  %v942_v2 = vadd.f32 %v941_v33, %v877_v57 }
 0x1e0   : > { %v1006_v25 = vpop.f32.mrf.mxu2 }
 0x1e1   : > { %v1007_v35 = vadd.f32 %v1006_v25, %v942_v2 }
 0x1e2   : > { %v879_v10 = vpop.f32.mrf.mxu0 }
 0x1e3   : > { %v1026_v36 = vmax.f32 %v1007_v35, 0.0  ;;  %v880_v61 = vadd.f32 %v879_v10, %v815_v34 }
 0x1e4   : > { %v944_v28 = vpop.f32.mrf.mxu1 }
 0x1e5   : > { %1106 = vmatmul.f32.gmra.mxu3 %v1026_v36  ;;  %v945_v37 = vadd.f32 %v944_v28, %v880_v61 }
 0x1e8   : > { %v1009_v24 = vpop.f32.mrf.mxu2 }
 0x1e9   : > { %v1010_v38 = vadd.f32 %v1009_v24, %v945_v37 }
 0x1eb   : > { %v1027_v40 = vmax.f32 %v1010_v38, 0.0 }
 0x1ed   : > { %1109 = vmatmul.f32.gmra.mxu3 %v1027_v40 }
 0x1f8   : > { %v1065_v0 = vpop.f32.mrf.mxu3 }
 0x1f9   : > { %v1066_v45 = vadd.f32 %v1613_v42, %v1065_v0 }
 0x1fb   : > { %1113 = vst [vmem:[%s2231_s14] sm:$0xff] %v1066_v45 }
 0x200   : > { %v1068_v49 = vpop.f32.mrf.mxu3 }
 0x201   : > { %v1069_v1 = vadd.f32 %v1613_v42, %v1068_v49 }
 0x203   : > { %1114 = vst [vmem:[%s2231_s14 + $0x8] sm:$0xff] %v1069_v1 }
 0x208   : > { %v1071_v52 = vpop.f32.mrf.mxu3 }
 0x209   : > { %v1072_v53 = vadd.f32 %v1613_v42, %v1071_v52 }
 0x20b   : > { %1115 = vst [vmem:[%s2231_s14 + $0x10] sm:$0xff] %v1072_v53 }
 0x210   : > { %v1074_v39 = vpop.f32.mrf.mxu3 }
 0x211   : > { %v1075_v55 = vadd.f32 %v1613_v42, %v1074_v39 }
 0x213   : > { %1116 = vst [vmem:[%s2231_s14 + $0x18] sm:$0xff] %v1075_v55 }
 0x218   : > { %v1077_v41 = vpop.f32.mrf.mxu3 }
 0x219   : > { %v1078_v4 = vadd.f32 %v1613_v42, %v1077_v41 }
 0x21b   : > { %1117 = vst [vmem:[%s2231_s14 + $0x20] sm:$0xff] %v1078_v4 }
 0x220   : > { %v1080_v43 = vpop.f32.mrf.mxu3 }
 0x221   : > { %v1081_v44 = vadd.f32 %v1613_v42, %v1080_v43 }
 0x223   : > { %1118 = vst [vmem:[%s2231_s14 + $0x28] sm:$0xff] %v1081_v44 }
 0x228   : > { %v1083_v56 = vpop.f32.mrf.mxu3 }
 0x229   : > { %v1084_v62 = vadd.f32 %v1613_v42, %v1083_v56 }
 0x22b   : > { %1119 = vst [vmem:[%s2231_s14 + $0x30] sm:$0xff] %v1084_v62 }
 0x230   : > { %v1086_v7 = vpop.f32.mrf.mxu3 }
 0x231   : > { %v1087_v63 = vadd.f32 %v1613_v42, %v1086_v7 }
 0x233   : > { %1120 = vst [vmem:[%s2231_s14 + $0x38] sm:$0xff] %v1087_v63 }
 0x238   : > { %v1089_v8 = vpop.f32.mrf.mxu3 }
 0x239   : > { %v1090_v59 = vadd.f32 %v1613_v42, %v1089_v8 }
 0x23b   : > { %1121 = vst [vmem:[%s2231_s14 + $0x40] sm:$0xff] %v1090_v59 }
 0x240   : > { %v1092_v3 = vpop.f32.mrf.mxu3 }
 0x241   : > { %v1093_v5 = vadd.f32 %v1613_v42, %v1092_v3 }
 0x243   : > { %1122 = vst [vmem:[%s2231_s14 + $0x48] sm:$0xff] %v1093_v5 }
 0x248   : > { %v1095_v60 = vpop.f32.mrf.mxu3 }
 0x249   : > { %v1096_v27 = vadd.f32 %v1613_v42, %v1095_v60 }
 0x24b   : > { %1123 = vst [vmem:[%s2231_s14 + $0x50] sm:$0xff] %v1096_v27 }
 0x250   : > { %v1098_v11 = vpop.f32.mrf.mxu3 }
 0x251   : > { %v1099_v6 = vadd.f32 %v1613_v42, %v1098_v11 }
 0x253   : > { %1124 = vst [vmem:[%s2231_s14 + $0x58] sm:$0xff] %v1099_v6 }
 0x258   : > { %v1101_v47 = vpop.f32.mrf.mxu3 }
 0x259   : > { %v1102_v9 = vadd.f32 %v1613_v42, %v1101_v47 }
 0x25b   : > { %1125 = vst [vmem:[%s2231_s14 + $0x60] sm:$0xff] %v1102_v9 }
 0x260   : > { %v1104_v12 = vpop.f32.mrf.mxu3 }
 0x261   : > { %v1105_v14 = vadd.f32 %v1613_v42, %v1104_v12 }
 0x263   : > { %1126 = vst [vmem:[%s2231_s14 + $0x68] sm:$0xff] %v1105_v14 }
 0x268   : > { %v1107_v13 = vpop.f32.mrf.mxu3 }
 0x269   : > { %v1108_v15 = vadd.f32 %v1613_v42, %v1107_v13 }
 0x26b   : > { %1127 = vst [vmem:[%s2231_s14 + $0x70] sm:$0xff] %v1108_v15 }
 0x26f   : > { %1135 = sbr.rel (!%p1902_p10) target bundleno = 676 (0x2a4), region = 56 }
 0x270   : > { %v1110_v16 = vpop.f32.mrf.mxu3 }
 0x271   : > { %v1111_v50 = vadd.f32 %v1613_v42, %v1110_v16 }
 0x273   : > { %1128 = vst [vmem:[%s2231_s14 + $0x78] sm:$0xff] %v1111_v50 }
 0x274   : > { %s2384_s15 = smov (!%p1138_p8, %s1137_s15), 16 }
 0x275   : > { %s1469_s25 = sshll.u32 %s2384_s15, 3 }
 0x276   : > { %p1472_p2 = scmp.eq.s32.totalorder %s1469_s25, 0 }
 0x277   : > { %s2262_s29 = sshrl.u32 (!%p1472_p2), %s2384_s15, 4 }
 0x278   : > { %1146 = sbr.rel (%p1472_p2) target bundleno = 676 (0x2a4), region = 60  ;;  %p1473_p10 = scmp.le.s32.totalorder (!%p1472_p2), %s2262_s29, 0 }
 0x27d   : > { %1370 = sbr.rel (%p1473_p10) target bundleno = 659 (0x293), region = 142  ;;  %s2370_s22 = smov (!%p1473_p10), %s2256_s21 }
 0x27e   : > { %s2371_s24 = smov (!%p1473_p10), %s2231_s14  ;;  %s2271_s6 = smov (!%p1473_p10), 0  }
 0x27f   : > { %s2273_s7 = smov (!%p1473_p10), 0  }
 0x282 LB: >> { %v1239_v17 = vld [vmem:[%s1791_s24] sm:$0xff]  ;;  %v1241_v51 = vld [vmem:[%s1791_s24 + $0x8] sm:$0xff]  ;;  %v1243_v19 = vld [vmem:[%s1791_s24 + $0x10] sm:$0xff]  ;;  %s1271_s8 = sadd.s32 1, %s1795_s6  ;;  %s1233_s7 = sadd.s32 1, %s1799_s7   ;;  %s1799_s7 = sphi %s2273_s7, %s1233_s7   ;;  %s1795_s6 = sphi %s2271_s6, %s2374_s6   ;;  %s1791_s24 = sphi %s2371_s24, %s2373_s24   ;;  %s1787_s22 = sphi %s2370_s22, %s2372_s22  }
 0x283   : >> { %1240 = vst [vmem:[%s1787_s22] sm:$0xff] %v1239_v17  ;;  %v1245_v31 = vld [vmem:[%s1791_s24 + $0x18] sm:$0xff]  ;;  %p1272_p7 = scmp.ge.s32.totalorder %s1271_s8, %s2262_s29  ;;  %v1247_v18 = vld [vmem:[%s1791_s24 + $0x20] sm:$0xff]  ;;  %v1249_v20 = vld [vmem:[%s1791_s24 + $0x28] sm:$0xff]  ;;  %p1232_p9 = scmp.ge.s32.totalorder %s1233_s7, %s2262_s29 }
 0x284   : >> { %1242 = vst [vmem:[%s1787_s22 + $0x8] sm:$0xff] %v1241_v51  ;;  %v1251_v48 = vld [vmem:[%s1791_s24 + $0x30] sm:$0xff]  ;;  %v1253_v23 = vld [vmem:[%s1791_s24 + $0x38] sm:$0xff]  ;;  %v1255_v54 = vld [vmem:[%s1791_s24 + $0x40] sm:$0xff] }
 0x285   : >> { %1244 = vst [vmem:[%s1787_s22 + $0x10] sm:$0xff] %v1243_v19  ;;  %s2386_s8 = smov (%p1272_p7, %s1271_s8), 0  ;;  %v1257_v21 = vld [vmem:[%s1791_s24 + $0x48] sm:$0xff]  ;;  %v1259_v26 = vld [vmem:[%s1791_s24 + $0x50] sm:$0xff]  ;;  %v1261_v46 = vld [vmem:[%s1791_s24 + $0x58] sm:$0xff] }
 0x286   : >> { %1246 = vst [vmem:[%s1787_s22 + $0x18] sm:$0xff] %v1245_v31  ;;  %s1474_s9 = sshll.u32 %s2386_s8, 7  ;;  %v1263_v30 = vld [vmem:[%s1791_s24 + $0x60] sm:$0xff]  ;;  %v1265_v22 = vld [vmem:[%s1791_s24 + $0x68] sm:$0xff]  ;;  %v1267_v29 = vld [vmem:[%s1791_s24 + $0x70] sm:$0xff]  ;;  %s2374_s6 = smov %s2386_s8 }
 0x287   : >> { %1248 = vst [vmem:[%s1787_s22 + $0x20] sm:$0xff] %v1247_v18  ;;  %s1276_s11 = scalar_lea.vmem %s2231_s14, %s1474_s9 [#allocation7]   ;;  %s1277_s28 = scalar_lea.vmem %s2256_s21, %s1474_s9   ;;  %v1269_v32 = vld [vmem:[%s1791_s24 + $0x78] sm:$0xff] }
 0x288   : >> { %1250 = vst [vmem:[%s1787_s22 + $0x28] sm:$0xff] %v1249_v20  ;;  %s2373_s24 = smov %s1276_s11 }
 0x289   : >> { %1252 = vst [vmem:[%s1787_s22 + $0x30] sm:$0xff] %v1251_v48 }
 0x28a   : >> { %1254 = vst [vmem:[%s1787_s22 + $0x38] sm:$0xff] %v1253_v23 }
 0x28b   : >> { %1256 = vst [vmem:[%s1787_s22 + $0x40] sm:$0xff] %v1255_v54 }
 0x28c   : >> { %1258 = vst [vmem:[%s1787_s22 + $0x48] sm:$0xff] %v1257_v21 }
 0x28d   : >> { %1260 = vst [vmem:[%s1787_s22 + $0x50] sm:$0xff] %v1259_v26 }
 0x28e   : >> { %1262 = vst [vmem:[%s1787_s22 + $0x58] sm:$0xff] %v1261_v46  ;;  %1235 = sbr.rel (!%p1232_p9) target bundleno = 642 (0x282), region = 148 }
 0x28f   : >> { %1264 = vst [vmem:[%s1787_s22 + $0x60] sm:$0xff] %v1263_v30 }
 0x290   : >> { %1266 = vst [vmem:[%s1787_s22 + $0x68] sm:$0xff] %v1265_v22 }
 0x291   : >> { %1268 = vst [vmem:[%s1787_s22 + $0x70] sm:$0xff] %v1267_v29 }
 0x292   : >> { %1270 = vst [vmem:[%s1787_s22 + $0x78] sm:$0xff] %v1269_v32  ;;  %s2372_s22 = smov %s1277_s28 }
 0x293 PF: > { %s2335_s30 = sand.u32 15, %s2384_s15   ;;  %s1485_s10 = sshll.u32 %s2262_s29, 7 }
 0x294   : > { %s1282_s27 = scalar_lea.vmem %s2231_s14, %s1485_s10 [#allocation7]   ;;  %s1284_s13 = scalar_lea.vmem %s2256_s21, %s1485_s10  }
 0x295   : > { %p1479_p12 = scmp.le.s32.totalorder %s2335_s30, 0 }
 0x296   : > { %s1801_s18 = smov (!%p1479_p12), %s1284_s13   ;;  %s1805_s12 = smov (!%p1479_p12), %s1282_s27  }
 0x297   : > { %1384 = sbr.rel (%p1479_p12) target bundleno = 676 (0x2a4), region = 153  ;;  %s1809_s16 = smov (!%p1479_p12), 0  }
 0x298   : > { %s1813_s17 = smov (!%p1479_p12), 0  }
 0x29c LB: >> { %v1294_v57 = vld [vmem:[%s1807_s12] sm:$0xff]  ;;  %s1296_s15 = sadd.s32 1, %s1811_s16  ;;  %s1288_s17 = sadd.s32 1, %s1815_s17   ;;  %s1815_s17 = sphi %s1813_s17, %s1288_s17   ;;  %s1811_s16 = sphi %s1809_s16, %s1810_s16   ;;  %s1807_s12 = sphi %s1805_s12, %s1301_s12   ;;  %s1803_s18 = sphi %s1801_s18, %s1302_s18  }
 0x29d   : >> { %1295 = vst [vmem:[%s1803_s18] sm:$0xff] %v1294_v57  ;;  %p1297_p13 = scmp.ge.s32.totalorder %s1296_s15, %s2335_s30  ;;  %p1287_p0 = scmp.ge.s32.totalorder %s1288_s17, %s2335_s30 }
 0x29f   : >> { %s2388_s15 = smov (%p1297_p13, %s1296_s15), 0  ;;  %1290 = sbr.rel (!%p1287_p0) target bundleno = 668 (0x29c), region = 159 }
 0x2a0   : >> { %s1480_s14 = sshll.u32 %s2388_s15, 3  ;;  %s1810_s16 = smov %s2388_s15  }
 0x2a1   : >> { %s1301_s12 = scalar_lea.vmem %s1282_s27, %s1480_s14 [#allocation7]   ;;  %s1302_s18 = scalar_lea.vmem %s1284_s13, %s1480_s14  }
 0x2a4 PF: > { %p16_p1 = scmp.ge.s32.totalorder %s1876_s23, 4   ;;  %s2375_s18 = smov %s1775_s19 }
 0x2a5   : > { %s2376_s19 = smov %s1779_s20  ;;  %s2377_s20 = smov %s1886_s26 }
 0x2a6   : > { %s2378_s21 = smov %s1876_s23  ;;  %18 = sbr.rel (!%p16_p1) target bundleno = 4 (0x4), region = 170 }
 0x2ab   :  { %1318 = vsyncpa [#allocation3], 1 }
 0x2ac   :  { %1320 = vsyncpa [#allocation3 + $0x1], 1 }
 0x2ad   :  { %1321 = vsyncpa [#allocation5], 1 }

</bundles_post_ra>
